<compile_context>
chip_gen: v5e
topology: v5e:2x2
jax: 0.10.0
libtpu: 0.0.40
codegen_flags: <defaults>
</compile_context>

<pallas_src>
import functools

import jax
import jax.numpy as jnp
from jax.experimental import pallas as pl
from jax.experimental.pallas import tpu as pltpu


def _round_up(x, m):
    return (x + m - 1) // m * m


# ----------------------------------------------------------------------------------
# Fused kernel: [input matmul prologue] -> [LSTM time loop] -> [projection epilogue]
# Grid: independent batch tiles only ("parallel").
# ----------------------------------------------------------------------------------
def _fused_char_decoder_kernel(x_ref, wih_ref, b_ref, whh_ref, wout_ref, bout_ref,
                               h0_ref, c0_ref,
                               scores_ref, hlast_ref, clast_ref,
                               gx_ref, hall_ref,
                               *, length, batch_tile, hidden_pad, unroll, matmul_dtype):
    Hp = hidden_pad
    TB = batch_tile
    Ep = x_ref.shape[-1]
    Vp = wout_ref.shape[-1]
    cdt = jnp.float32 if matmul_dtype is None else matmul_dtype

    # ---- Phase 1 (fused prologue): gates_x for this batch tile, one MXU-shaped matmul. ----
    # (L, TB, Ep) -> (L*TB, Ep) is a pure collapse of leading dims (Ep multiple of 128,
    # TB multiple of 8), no relayout.
    x2d = x_ref[...].reshape(length * TB, Ep).astype(cdt)
    gx2d = jnp.dot(x2d, wih_ref[...].astype(cdt),
                   preferred_element_type=jnp.float32) + b_ref[...]
    gx_ref[...] = gx2d.reshape(length, TB, 4 * Hp)

    whh = whh_ref[...].astype(cdt)                       # (Hp, 4*Hp), loaded/cast once

    def _sig(x):
        # sigmoid(x) = 0.5*(tanh(0.5*x)+1): a single EUP pass instead of exp + reciprocal.
        return 0.5 * (jnp.tanh(0.5 * x) + 1.0)

    def step(t, carry):
        h_prev, c_prev = carry
        # Only the recurrent matmul is on the serial critical path; the input part
        # (incl. bias) was precomputed above.
        gates = gx_ref[t] + jnp.dot(h_prev.astype(cdt), whh,
                                    preferred_element_type=jnp.float32)
        # Hp is a multiple of 128 -> every gate slice is lane-aligned (no XLU shuffles).
        i_g = _sig(gates[:, 0 * Hp:1 * Hp])
        f_g = _sig(gates[:, 1 * Hp:2 * Hp])
        g_g = jnp.tanh(gates[:, 2 * Hp:3 * Hp])
        o_g = _sig(gates[:, 3 * Hp:4 * Hp])
        c_new = f_g * c_prev + i_g * g_g
        h_new = o_g * jnp.tanh(c_new)
        hall_ref[t] = h_new                              # stays in VMEM; projected below
        return (h_new, c_new)

    h_last, c_last = jax.lax.fori_loop(
        0, length, step, (h0_ref[...], c0_ref[...]), unroll=unroll)
    hlast_ref[...] = h_last
    clast_ref[...] = c_last

    # ---- Phase 3 (fused epilogue): project the whole hidden slab at once, lane-dense Vp. ----
    h2d = hall_ref[...].reshape(length * TB, Hp).astype(cdt)
    s2d = jnp.dot(h2d, wout_ref[...].astype(cdt),
                  preferred_element_type=jnp.float32) + bout_ref[...]
    scores_ref[...] = s2d.reshape(length, TB, Vp)


def _vmem_estimate_bytes(length, TB, Ep, Hp, Vp):
    f32 = 4
    weights = (Ep * 4 * Hp + 4 * Hp + Hp * 4 * Hp + Hp * Vp + Vp) * f32
    per_tile_io = (length * TB * Ep + length * TB * Vp + 4 * TB * Hp) * f32
    scratch = (length * TB * 4 * Hp + length * TB * Hp) * f32
    # inputs/outputs are double-buffered by the pipeline; scratch is single.
    return 2 * (weights + per_tile_io) + scratch


def _run_fused(x_emb, wih_p, b_p, whh_p, wout_p, bout_p, h0, c0,
               *, hidden_pad, vocab_pad, batch_tile, matmul_dtype):
    length, Bp, Ep = x_emb.shape
    Hp, Vp, TB = hidden_pad, vocab_pad, batch_tile
    unroll = max(1, min(length, 8))        # bounded unroll: LLO visibility, bounded code size

    kernel = functools.partial(
        _fused_char_decoder_kernel,
        length=length, batch_tile=TB, hidden_pad=Hp,
        unroll=unroll, matmul_dtype=matmul_dtype)

    vmem_limit = min(64 * 1024 * 1024,
                     max(32 * 1024 * 1024,
                         int(_vmem_estimate_bytes(length, TB, Ep, Hp, Vp) * 1.25)))

    grid_spec = pltpu.PrefetchScalarGridSpec(
        num_scalar_prefetch=0,
        grid=(Bp // TB,),
        in_specs=[
            pl.BlockSpec((length, TB, Ep), lambda i: (0, i, 0)),   # embedded chars (tile)
            pl.BlockSpec((Ep, 4 * Hp), lambda i: (0, 0)),          # W_ih^T  (resident)
            pl.BlockSpec((1, 4 * Hp), lambda i: (0, 0)),           # bias
            pl.BlockSpec((Hp, 4 * Hp), lambda i: (0, 0)),          # W_hh^T  (resident)
            pl.BlockSpec((Hp, Vp), lambda i: (0, 0)),              # W_out^T (resident)
            pl.BlockSpec((1, Vp), lambda i: (0, 0)),               # b_out
            pl.BlockSpec((TB, Hp), lambda i: (i, 0)),              # h0
            pl.BlockSpec((TB, Hp), lambda i: (i, 0)),              # c0
        ],
        out_specs=[
            pl.BlockSpec((length, TB, Vp), lambda i: (0, i, 0)),   # scores (lane-dense Vp)
            pl.BlockSpec((TB, Hp), lambda i: (i, 0)),              # h_last
            pl.BlockSpec((TB, Hp), lambda i: (i, 0)),              # c_last
        ],
        scratch_shapes=[
            pltpu.VMEM((length, TB, 4 * Hp), jnp.float32),         # gates_x slab (VMEM only)
            pltpu.VMEM((length, TB, Hp), jnp.float32),             # h_all slab  (VMEM only)
        ],
    )
    return pl.pallas_call(
        kernel,
        grid_spec=grid_spec,
        out_shape=(
            jax.ShapeDtypeStruct((length, Bp, Vp), jnp.float32),
            jax.ShapeDtypeStruct((Bp, Hp), jnp.float32),
            jax.ShapeDtypeStruct((Bp, Hp), jnp.float32),
        ),
        compiler_params=pltpu.CompilerParams(
            dimension_semantics=("parallel",),      # batch tiles are independent
            vmem_limit_bytes=vmem_limit),
    )(x_emb, wih_p, b_p, whh_p, wout_p, bout_p, h0, c0)


# ----------------------------------------------------------------------------------
# Forward wrapper (matches CharDecoder.forward semantics).
# ----------------------------------------------------------------------------------
def char_decoder_forward(char_input, params, dec_hidden=None, *, matmul_dtype=None):
    """char_input: (length, batch) int32
    dec_hidden: optional tuple of (1, batch, hidden) f32
    matmul_dtype: None (f32, exact) or jnp.bfloat16 (faster MXU on v6e/v7x)
    returns: scores (length, batch, vocab), (h_last, c_last) each (1, batch, hidden)."""
    emb_table = params["emb"]             # (vocab, emb)
    wih_t = params["wih_t"]               # (emb, 4H)
    whh_t = params["whh_t"]               # (H, 4H)
    b = params["b"]                       # (1, 4H)
    wout_t = params["wout_t"]             # (H, vocab)
    bout = params["bout"]                 # (1, vocab)

    length, batch = char_input.shape
    emb_dim = emb_table.shape[1]
    hidden = whh_t.shape[0]
    vocab = wout_t.shape[1]

    Hp = _round_up(hidden, 128)           # lane-aligned gate slices
    Vp = _round_up(vocab, 128)            # lane-dense scores output
    Ep = _round_up(emb_dim, 128)          # clean in-kernel reshape / DMA alignment

    # Batch tiling: cap at 64 (vreg pressure), prefer >=2 tiles when possible (v7x megacore).
    Bp8 = _round_up(batch, 8)
    TB = min(64, Bp8)
    if Bp8 // TB < 2 and Bp8 >= 16:
        TB = _round_up((Bp8 + 1) // 2, 8)
    Bp = _round_up(Bp8, TB)

    # --- pad weights with a gate-aware layout (padded hidden lanes stay exactly zero) ---
    def pad_gate_cols(w):                 # (..., 4H) -> (..., 4*Hp)
        lead = w.shape[:-1]
        w4 = w.reshape(lead + (4, hidden))
        w4 = jnp.pad(w4, [(0, 0)] * len(lead) + [(0, 0), (0, Hp - hidden)])
        return w4.reshape(lead + (4 * Hp,))

    wih_p = pad_gate_cols(jnp.pad(wih_t, ((0, Ep - emb_dim), (0, 0))))  # (Ep, 4Hp)
    b_p = pad_gate_cols(b)                                              # (1, 4Hp)
    whh_p = pad_gate_cols(jnp.pad(whh_t, ((0, Hp - hidden), (0, 0))))   # (Hp, 4Hp)
    wout_p = jnp.pad(wout_t, ((0, Hp - hidden), (0, Vp - vocab)))       # (Hp, Vp)
    bout_p = jnp.pad(bout, ((0, 0), (0, Vp - vocab)))                   # (1, Vp)

    # TODO(synk): embedding gather stays in plain JAX (row gather is glue; no win as a kernel).
    x_emb = emb_table[char_input]                                       # (L, B, E)
    x_emb = jnp.pad(x_emb, ((0, 0), (0, Bp - batch), (0, Ep - emb_dim)))  # (L, Bp, Ep)

    if dec_hidden is None:
        h0 = jnp.zeros((Bp, Hp), jnp.float32)
        c0 = jnp.zeros((Bp, Hp), jnp.float32)
    else:
        h0 = jnp.pad(dec_hidden[0].reshape(batch, hidden),
                     ((0, Bp - batch), (0, Hp - hidden)))
        c0 = jnp.pad(dec_hidden[1].reshape(batch, hidden),
                     ((0, Bp - batch), (0, Hp - hidden)))

    scores_p, h_last, c_last = _run_fused(
        x_emb, wih_p, b_p, whh_p, wout_p, bout_p, h0, c0,
        hidden_pad=Hp, vocab_pad=Vp, batch_tile=TB, matmul_dtype=matmul_dtype)

    scores = scores_p[:, :batch, :vocab]
    h_last = h_last[:batch, :hidden].reshape(1, batch, hidden)
    c_last = c_last[:batch, :hidden].reshape(1, batch, hidden)
    return scores, (h_last, c_last)


# ----------------------------------------------------------------------------------
# Pure-JAX reference (lax.scan LSTM) for correctness checking.
# ----------------------------------------------------------------------------------
def _reference_forward(char_input, params, dec_hidden=None):
    emb_table = params["emb"]
    wih_t, whh_t, b = params["wih_t"], params["whh_t"], params["b"]
    wout_t, bout = params["wout_t"], params["bout"]
    length, batch = char_input.shape
    hidden = whh_t.shape[0]
    x_emb = emb_table[char_input]
    if dec_hidden is None:
        h0 = jnp.zeros((batch, hidden), jnp.float32)
        c0 = jnp.zeros((batch, hidden), jnp.float32)
    else:
        h0 = dec_hidden[0].reshape(batch, hidden)
        c0 = dec_hidden[1].reshape(batch, hidden)

    def step(carry, x_t):
        h, c = carry
        gates = x_t @ wih_t + h @ whh_t + b
        H = hidden
        i = jax.nn.sigmoid(gates[:, :H])
        f = jax.nn.sigmoid(gates[:, H:2 * H])
        g = jnp.tanh(gates[:, 2 * H:3 * H])
        o = jax.nn.sigmoid(gates[:, 3 * H:])
        c_new = f * c + i * g
        h_new = o * jnp.tanh(c_new)
        return (h_new, c_new), h_new @ wout_t + bout

    (h_last, c_last), scores = jax.lax.scan(step, (h0, c0), x_emb)
    return scores, (h_last[None], c_last[None])


def init_params(key, vocab_size, char_embedding_size, hidden_size, pad_idx):
    ks = jax.random.split(key, 7)
    scale = 1.0 / jnp.sqrt(hidden_size)
    emb = jax.random.normal(ks[0], (vocab_size, char_embedding_size), jnp.float32) * 0.1
    emb = emb.at[pad_idx].set(0.0)  # padding_idx row is zero, as in nn.Embedding
    wih = jax.random.uniform(ks[1], (4 * hidden_size, char_embedding_size), jnp.float32, -scale, scale)
    whh = jax.random.uniform(ks[2], (4 * hidden_size, hidden_size), jnp.float32, -scale, scale)
    b_ih = jax.random.uniform(ks[3], (4 * hidden_size,), jnp.float32, -scale, scale)
    b_hh = jax.random.uniform(ks[4], (4 * hidden_size,), jnp.float32, -scale, scale)
    wout = jax.random.uniform(ks[5], (vocab_size, hidden_size), jnp.float32, -scale, scale)
    bout = jax.random.uniform(ks[6], (vocab_size,), jnp.float32, -scale, scale)
    return {
        "emb": emb,
        "wih_t": wih.T,                       # (emb, 4H)
        "whh_t": whh.T,                       # (H, 4H)
        "b": (b_ih + b_hh)[None, :],          # (1, 4H)
        "wout_t": wout.T,                     # (H, vocab)
        "bout": bout[None, :],                # (1, vocab)
    }


if __name__ == "__main__":
    # Small shapes consistent with the module's forward:
    length, batch = 8, 4
    hidden_size = 32
    char_embedding_size = 50
    vocab_size = 30
    pad_idx = 0

    key = jax.random.PRNGKey(0)
    k_param, k_in, k_h, k_c = jax.random.split(key, 4)

    params = init_params(k_param, vocab_size, char_embedding_size, hidden_size, pad_idx)
    char_input = jax.random.randint(k_in, (length, batch), 0, vocab_size, jnp.int32)
    dec_hidden = (
        jax.random.normal(k_h, (1, batch, hidden_size), jnp.float32) * 0.1,
        jax.random.normal(k_c, (1, batch, hidden_size), jnp.float32) * 0.1,
    )

    # f32 path (exact vs. reference).
    scores, (h_last, c_last) = char_decoder_forward(char_input, params, dec_hidden)
    jax.block_until_ready((scores, h_last, c_last))

    # Verify against a pure-JAX reference implementation.
    scores_ref, (h_ref, c_ref) = _reference_forward(char_input, params, dec_hidden)
    assert scores.shape == (length, batch, vocab_size)
    assert h_last.shape == (1, batch, hidden_size) and c_last.shape == (1, batch, hidden_size)
    assert jnp.allclose(scores, scores_ref, rtol=1e-3, atol=1e-4)
    assert jnp.allclose(h_last, h_ref, rtol=1e-3, atol=1e-4)
    assert jnp.allclose(c_last, c_ref, rtol=1e-3, atol=1e-4)

    # Also check the default-hidden-state path.
    scores0, _ = char_decoder_forward(char_input, params, None)
    scores0_ref, _ = _reference_forward(char_input, params, None)
    jax.block_until_ready(scores0)
    assert jnp.allclose(scores0, scores0_ref, rtol=1e-3, atol=1e-4)

    print("KERNEL_OK")
</pallas_src>

<mosaic_0001>
module attributes {stable_mosaic.version = 11 : i64} {
  func.func @_fused_char_decoder_kernel(%arg0: i32, %arg1: memref<8x8x128xf32, #tpu.memory_space<vmem>>, %arg2: memref<128x512xf32, #tpu.memory_space<vmem>>, %arg3: memref<1x512xf32, #tpu.memory_space<vmem>>, %arg4: memref<128x512xf32, #tpu.memory_space<vmem>>, %arg5: memref<128x128xf32, #tpu.memory_space<vmem>>, %arg6: memref<1x128xf32, #tpu.memory_space<vmem>>, %arg7: memref<8x128xf32, #tpu.memory_space<vmem>>, %arg8: memref<8x128xf32, #tpu.memory_space<vmem>>, %arg9: memref<8x8x128xf32, #tpu.memory_space<vmem>>, %arg10: memref<8x128xf32, #tpu.memory_space<vmem>>, %arg11: memref<8x128xf32, #tpu.memory_space<vmem>>, %arg12: memref<8x8x512xf32, #tpu.memory_space<vmem>>, %arg13: memref<8x8x128xf32, #tpu.memory_space<vmem>>) attributes {dimension_semantics = [#tpu.dimension_semantics<parallel>], iteration_bounds = array<i64: 1>, scalar_prefetch = 0 : i64, scratch_operands = 2 : i64, tpu.core_type = #tpu.core_type<tc>, window_params = [{transform_indices = @transform_0, window_bounds = array<i64: 8, 8, 128>}, {pipeline_mode = #tpu.pipeline_mode<synchronous>, transform_indices = @transform_1, window_bounds = array<i64: 128, 512>}, {pipeline_mode = #tpu.pipeline_mode<synchronous>, transform_indices = @transform_2, window_bounds = array<i64: 1, 512>}, {pipeline_mode = #tpu.pipeline_mode<synchronous>, transform_indices = @transform_3, window_bounds = array<i64: 128, 512>}, {pipeline_mode = #tpu.pipeline_mode<synchronous>, transform_indices = @transform_4, window_bounds = array<i64: 128, 128>}, {pipeline_mode = #tpu.pipeline_mode<synchronous>, transform_indices = @transform_5, window_bounds = array<i64: 1, 128>}, {transform_indices = @transform_6, window_bounds = array<i64: 8, 128>}, {transform_indices = @transform_7, window_bounds = array<i64: 8, 128>}, {transform_indices = @transform_8, window_bounds = array<i64: 8, 8, 128>}, {transform_indices = @transform_9, window_bounds = array<i64: 8, 128>}, {transform_indices = @transform_10, window_bounds = array<i64: 8, 128>}]} {
    %c0 = arith.constant 0 : index
    %c0_0 = arith.constant 0 : index
    %c0_1 = arith.constant 0 : index
    %0 = vector.load %arg1[%c0, %c0_0, %c0_1] : memref<8x8x128xf32, #tpu.memory_space<vmem>>, vector<8x8x128xf32>
    %1 = vector.shape_cast %0 : vector<8x8x128xf32> to vector<64x128xf32>
    %c0_2 = arith.constant 0 : index
    %c0_3 = arith.constant 0 : index
    %2 = vector.load %arg2[%c0_2, %c0_3] : memref<128x512xf32, #tpu.memory_space<vmem>>, vector<128x512xf32>
    %cst = arith.constant dense<0.000000e+00> : vector<64x512xf32>
    %3 = tpu.matmul %1, %2, %cst {dimension_numbers = #tpu.dot_dimension_numbers<[1], [0], [0], [1], [0, 0, 1, 1], [], []>} : vector<64x128xf32>, vector<128x512xf32>, vector<64x512xf32> -> vector<64x512xf32>
    %c0_4 = arith.constant 0 : index
    %c0_5 = arith.constant 0 : index
    %4 = vector.load %arg3[%c0_4, %c0_5] : memref<1x512xf32, #tpu.memory_space<vmem>>, vector<1x512xf32>
    %5 = vector.broadcast %4 : vector<1x512xf32> to vector<64x512xf32>
    %6 = arith.addf %3, %5 : vector<64x512xf32>
    %7 = vector.shape_cast %6 : vector<64x512xf32> to vector<8x8x512xf32>
    %c0_6 = arith.constant 0 : index
    %c0_7 = arith.constant 0 : index
    %c0_8 = arith.constant 0 : index
    %8 = vector.load %arg12[%c0_6, %c0_7, %c0_8] : memref<8x8x512xf32, #tpu.memory_space<vmem>>, vector<8x8x512xf32>
    tpu.vector_store %arg12[%c0_6, %c0_7, %c0_8], %7 {strides = array<i32>} : memref<8x8x512xf32, #tpu.memory_space<vmem>>, vector<8x8x512xf32>,
    %c0_9 = arith.constant 0 : index
    %c0_10 = arith.constant 0 : index
    %9 = vector.load %arg4[%c0_9, %c0_10] : memref<128x512xf32, #tpu.memory_space<vmem>>, vector<128x512xf32>
    %c0_11 = arith.constant 0 : index
    %c0_12 = arith.constant 0 : index
    %10 = vector.load %arg7[%c0_11, %c0_12] : memref<8x128xf32, #tpu.memory_space<vmem>>, vector<8x128xf32>
    %c0_13 = arith.constant 0 : index
    %c0_14 = arith.constant 0 : index
    %11 = vector.load %arg8[%c0_13, %c0_14] : memref<8x128xf32, #tpu.memory_space<vmem>>, vector<8x128xf32>
    %c0_i32 = arith.constant 0 : i32
    %12 = arith.index_cast %c0_i32 : i32 to index
    %c0_15 = arith.constant 0 : index
    %c0_16 = arith.constant 0 : index
    %13 = vector.load %arg12[%12, %c0_15, %c0_16] : memref<8x8x512xf32, #tpu.memory_space<vmem>>, vector<1x8x512xf32>
    %14 = vector.shape_cast %13 : vector<1x8x512xf32> to vector<8x512xf32>
    %cst_17 = arith.constant dense<0.000000e+00> : vector<8x512xf32>
    %15 = tpu.matmul %10, %9, %cst_17 {dimension_numbers = #tpu.dot_dimension_numbers<[1], [0], [0], [1], [0, 0, 1, 1], [], []>} : vector<8x128xf32>, vector<128x512xf32>, vector<8x512xf32> -> vector<8x512xf32>
    %16 = arith.addf %14, %15 : vector<8x512xf32>
    %17 = vector.extract_strided_slice %16 {offsets = [0, 0], sizes = [8, 128], strides = [1, 1]} : vector<8x512xf32> to vector<8x128xf32>
    %cst_18 = arith.constant 5.000000e-01 : f32
    %18 = vector.broadcast %cst_18 : f32 to vector<8x128xf32>
    %19 = arith.mulf %18, %17 : vector<8x128xf32>
    %20 = math.tanh %19 : vector<8x128xf32>
    %cst_19 = arith.constant 1.000000e+00 : f32
    %21 = vector.broadcast %cst_19 : f32 to vector<8x128xf32>
    %22 = arith.addf %20, %21 : vector<8x128xf32>
    %cst_20 = arith.constant 5.000000e-01 : f32
    %23 = vector.broadcast %cst_20 : f32 to vector<8x128xf32>
    %24 = arith.mulf %23, %22 : vector<8x128xf32>
    %25 = vector.extract_strided_slice %16 {offsets = [0, 128], sizes = [8, 128], strides = [1, 1]} : vector<8x512xf32> to vector<8x128xf32>
    %cst_21 = arith.constant 5.000000e-01 : f32
    %26 = vector.broadcast %cst_21 : f32 to vector<8x128xf32>
    %27 = arith.mulf %26, %25 : vector<8x128xf32>
    %28 = math.tanh %27 : vector<8x128xf32>
    %cst_22 = arith.constant 1.000000e+00 : f32
    %29 = vector.broadcast %cst_22 : f32 to vector<8x128xf32>
    %30 = arith.addf %28, %29 : vector<8x128xf32>
    %cst_23 = arith.constant 5.000000e-01 : f32
    %31 = vector.broadcast %cst_23 : f32 to vector<8x128xf32>
    %32 = arith.mulf %31, %30 : vector<8x128xf32>
    %33 = vector.extract_strided_slice %16 {offsets = [0, 256], sizes = [8, 128], strides = [1, 1]} : vector<8x512xf32> to vector<8x128xf32>
    %34 = math.tanh %33 : vector<8x128xf32>
    %35 = vector.extract_strided_slice %16 {offsets = [0, 384], sizes = [8, 128], strides = [1, 1]} : vector<8x512xf32> to vector<8x128xf32>
    %cst_24 = arith.constant 5.000000e-01 : f32
    %36 = vector.broadcast %cst_24 : f32 to vector<8x128xf32>
    %37 = arith.mulf %36, %35 : vector<8x128xf32>
    %38 = math.tanh %37 : vector<8x128xf32>
    %cst_25 = arith.constant 1.000000e+00 : f32
    %39 = vector.broadcast %cst_25 : f32 to vector<8x128xf32>
    %40 = arith.addf %38, %39 : vector<8x128xf32>
    %cst_26 = arith.constant 5.000000e-01 : f32
    %41 = vector.broadcast %cst_26 : f32 to vector<8x128xf32>
    %42 = arith.mulf %41, %40 : vector<8x128xf32>
    %43 = arith.mulf %32, %11 : vector<8x128xf32>
    %44 = arith.mulf %24, %34 : vector<8x128xf32>
    %45 = arith.addf %43, %44 : vector<8x128xf32>
    %46 = math.tanh %45 : vector<8x128xf32>
    %47 = arith.mulf %42, %46 : vector<8x128xf32>
    %48 = arith.index_cast %c0_i32 : i32 to index
    %c0_27 = arith.constant 0 : index
    %c0_28 = arith.constant 0 : index
    %49 = vector.load %arg13[%48, %c0_27, %c0_28] : memref<8x8x128xf32, #tpu.memory_space<vmem>>, vector<1x8x128xf32>
    %50 = vector.shape_cast %49 : vector<1x8x128xf32> to vector<8x128xf32>
    %51 = vector.shape_cast %47 : vector<8x128xf32> to vector<1x8x128xf32>
    tpu.vector_store %arg13[%48, %c0_27, %c0_28], %51 {strides = array<i32>} : memref<8x8x128xf32, #tpu.memory_space<vmem>>, vector<1x8x128xf32>,
    %c1_i32 = arith.constant 1 : i32
    %52 = arith.index_cast %c1_i32 : i32 to index
    %c0_29 = arith.constant 0 : index
    %c0_30 = arith.constant 0 : index
    %53 = vector.load %arg12[%52, %c0_29, %c0_30] : memref<8x8x512xf32, #tpu.memory_space<vmem>>, vector<1x8x512xf32>
    %54 = vector.shape_cast %53 : vector<1x8x512xf32> to vector<8x512xf32>
    %cst_31 = arith.constant dense<0.000000e+00> : vector<8x512xf32>
    %55 = tpu.matmul %47, %9, %cst_31 {dimension_numbers = #tpu.dot_dimension_numbers<[1], [0], [0], [1], [0, 0, 1, 1], [], []>} : vector<8x128xf32>, vector<128x512xf32>, vector<8x512xf32> -> vector<8x512xf32>
    %56 = arith.addf %54, %55 : vector<8x512xf32>
    %57 = vector.extract_strided_slice %56 {offsets = [0, 0], sizes = [8, 128], strides = [1, 1]} : vector<8x512xf32> to vector<8x128xf32>
    %cst_32 = arith.constant 5.000000e-01 : f32
    %58 = vector.broadcast %cst_32 : f32 to vector<8x128xf32>
    %59 = arith.mulf %58, %57 : vector<8x128xf32>
    %60 = math.tanh %59 : vector<8x128xf32>
    %cst_33 = arith.constant 1.000000e+00 : f32
    %61 = vector.broadcast %cst_33 : f32 to vector<8x128xf32>
    %62 = arith.addf %60, %61 : vector<8x128xf32>
    %cst_34 = arith.constant 5.000000e-01 : f32
    %63 = vector.broadcast %cst_34 : f32 to vector<8x128xf32>
    %64 = arith.mulf %63, %62 : vector<8x128xf32>
    %65 = vector.extract_strided_slice %56 {offsets = [0, 128], sizes = [8, 128], strides = [1, 1]} : vector<8x512xf32> to vector<8x128xf32>
    %cst_35 = arith.constant 5.000000e-01 : f32
    %66 = vector.broadcast %cst_35 : f32 to vector<8x128xf32>
    %67 = arith.mulf %66, %65 : vector<8x128xf32>
    %68 = math.tanh %67 : vector<8x128xf32>
    %cst_36 = arith.constant 1.000000e+00 : f32
    %69 = vector.broadcast %cst_36 : f32 to vector<8x128xf32>
    %70 = arith.addf %68, %69 : vector<8x128xf32>
    %cst_37 = arith.constant 5.000000e-01 : f32
    %71 = vector.broadcast %cst_37 : f32 to vector<8x128xf32>
    %72 = arith.mulf %71, %70 : vector<8x128xf32>
    %73 = vector.extract_strided_slice %56 {offsets = [0, 256], sizes = [8, 128], strides = [1, 1]} : vector<8x512xf32> to vector<8x128xf32>
    %74 = math.tanh %73 : vector<8x128xf32>
    %75 = vector.extract_strided_slice %56 {offsets = [0, 384], sizes = [8, 128], strides = [1, 1]} : vector<8x512xf32> to vector<8x128xf32>
    %cst_38 = arith.constant 5.000000e-01 : f32
    %76 = vector.broadcast %cst_38 : f32 to vector<8x128xf32>
    %77 = arith.mulf %76, %75 : vector<8x128xf32>
    %78 = math.tanh %77 : vector<8x128xf32>
    %cst_39 = arith.constant 1.000000e+00 : f32
    %79 = vector.broadcast %cst_39 : f32 to vector<8x128xf32>
    %80 = arith.addf %78, %79 : vector<8x128xf32>
    %cst_40 = arith.constant 5.000000e-01 : f32
    %81 = vector.broadcast %cst_40 : f32 to vector<8x128xf32>
    %82 = arith.mulf %81, %80 : vector<8x128xf32>
    %83 = arith.mulf %72, %45 : vector<8x128xf32>
    %84 = arith.mulf %64, %74 : vector<8x128xf32>
    %85 = arith.addf %83, %84 : vector<8x128xf32>
    %86 = math.tanh %85 : vector<8x128xf32>
    %87 = arith.mulf %82, %86 : vector<8x128xf32>
    %88 = arith.index_cast %c1_i32 : i32 to index
    %c0_41 = arith.constant 0 : index
    %c0_42 = arith.constant 0 : index
    %89 = vector.load %arg13[%88, %c0_41, %c0_42] : memref<8x8x128xf32, #tpu.memory_space<vmem>>, vector<1x8x128xf32>
    %90 = vector.shape_cast %89 : vector<1x8x128xf32> to vector<8x128xf32>
    %91 = vector.shape_cast %87 : vector<8x128xf32> to vector<1x8x128xf32>
    tpu.vector_store %arg13[%88, %c0_41, %c0_42], %91 {strides = array<i32>} : memref<8x8x128xf32, #tpu.memory_space<vmem>>, vector<1x8x128xf32>,
    %c2_i32 = arith.constant 2 : i32
    %92 = arith.index_cast %c2_i32 : i32 to index
    %c0_43 = arith.constant 0 : index
    %c0_44 = arith.constant 0 : index
    %93 = vector.load %arg12[%92, %c0_43, %c0_44] : memref<8x8x512xf32, #tpu.memory_space<vmem>>, vector<1x8x512xf32>
    %94 = vector.shape_cast %93 : vector<1x8x512xf32> to vector<8x512xf32>
    %cst_45 = arith.constant dense<0.000000e+00> : vector<8x512xf32>
    %95 = tpu.matmul %87, %9, %cst_45 {dimension_numbers = #tpu.dot_dimension_numbers<[1], [0], [0], [1], [0, 0, 1, 1], [], []>} : vector<8x128xf32>, vector<128x512xf32>, vector<8x512xf32> -> vector<8x512xf32>
    %96 = arith.addf %94, %95 : vector<8x512xf32>
    %97 = vector.extract_strided_slice %96 {offsets = [0, 0], sizes = [8, 128], strides = [1, 1]} : vector<8x512xf32> to vector<8x128xf32>
    %cst_46 = arith.constant 5.000000e-01 : f32
    %98 = vector.broadcast %cst_46 : f32 to vector<8x128xf32>
    %99 = arith.mulf %98, %97 : vector<8x128xf32>
    %100 = math.tanh %99 : vector<8x128xf32>
    %cst_47 = arith.constant 1.000000e+00 : f32
    %101 = vector.broadcast %cst_47 : f32 to vector<8x128xf32>
    %102 = arith.addf %100, %101 : vector<8x128xf32>
    %cst_48 = arith.constant 5.000000e-01 : f32
    %103 = vector.broadcast %cst_48 : f32 to vector<8x128xf32>
    %104 = arith.mulf %103, %102 : vector<8x128xf32>
    %105 = vector.extract_strided_slice %96 {offsets = [0, 128], sizes = [8, 128], strides = [1, 1]} : vector<8x512xf32> to vector<8x128xf32>
    %cst_49 = arith.constant 5.000000e-01 : f32
    %106 = vector.broadcast %cst_49 : f32 to vector<8x128xf32>
    %107 = arith.mulf %106, %105 : vector<8x128xf32>
    %108 = math.tanh %107 : vector<8x128xf32>
    %cst_50 = arith.constant 1.000000e+00 : f32
    %109 = vector.broadcast %cst_50 : f32 to vector<8x128xf32>
    %110 = arith.addf %108, %109 : vector<8x128xf32>
    %cst_51 = arith.constant 5.000000e-01 : f32
    %111 = vector.broadcast %cst_51 : f32 to vector<8x128xf32>
    %112 = arith.mulf %111, %110 : vector<8x128xf32>
    %113 = vector.extract_strided_slice %96 {offsets = [0, 256], sizes = [8, 128], strides = [1, 1]} : vector<8x512xf32> to vector<8x128xf32>
    %114 = math.tanh %113 : vector<8x128xf32>
    %115 = vector.extract_strided_slice %96 {offsets = [0, 384], sizes = [8, 128], strides = [1, 1]} : vector<8x512xf32> to vector<8x128xf32>
    %cst_52 = arith.constant 5.000000e-01 : f32
    %116 = vector.broadcast %cst_52 : f32 to vector<8x128xf32>
    %117 = arith.mulf %116, %115 : vector<8x128xf32>
    %118 = math.tanh %117 : vector<8x128xf32>
    %cst_53 = arith.constant 1.000000e+00 : f32
    %119 = vector.broadcast %cst_53 : f32 to vector<8x128xf32>
    %120 = arith.addf %118, %119 : vector<8x128xf32>
    %cst_54 = arith.constant 5.000000e-01 : f32
    %121 = vector.broadcast %cst_54 : f32 to vector<8x128xf32>
    %122 = arith.mulf %121, %120 : vector<8x128xf32>
    %123 = arith.mulf %112, %85 : vector<8x128xf32>
    %124 = arith.mulf %104, %114 : vector<8x128xf32>
    %125 = arith.addf %123, %124 : vector<8x128xf32>
    %126 = math.tanh %125 : vector<8x128xf32>
    %127 = arith.mulf %122, %126 : vector<8x128xf32>
    %128 = arith.index_cast %c2_i32 : i32 to index
    %c0_55 = arith.constant 0 : index
    %c0_56 = arith.constant 0 : index
    %129 = vector.load %arg13[%128, %c0_55, %c0_56] : memref<8x8x128xf32, #tpu.memory_space<vmem>>, vector<1x8x128xf32>
    %130 = vector.shape_cast %129 : vector<1x8x128xf32> to vector<8x128xf32>
    %131 = vector.shape_cast %127 : vector<8x128xf32> to vector<1x8x128xf32>
    tpu.vector_store %arg13[%128, %c0_55, %c0_56], %131 {strides = array<i32>} : memref<8x8x128xf32, #tpu.memory_space<vmem>>, vector<1x8x128xf32>,
    %c3_i32 = arith.constant 3 : i32
    %132 = arith.index_cast %c3_i32 : i32 to index
    %c0_57 = arith.constant 0 : index
    %c0_58 = arith.constant 0 : index
    %133 = vector.load %arg12[%132, %c0_57, %c0_58] : memref<8x8x512xf32, #tpu.memory_space<vmem>>, vector<1x8x512xf32>
    %134 = vector.shape_cast %133 : vector<1x8x512xf32> to vector<8x512xf32>
    %cst_59 = arith.constant dense<0.000000e+00> : vector<8x512xf32>
    %135 = tpu.matmul %127, %9, %cst_59 {dimension_numbers = #tpu.dot_dimension_numbers<[1], [0], [0], [1], [0, 0, 1, 1], [], []>} : vector<8x128xf32>, vector<128x512xf32>, vector<8x512xf32> -> vector<8x512xf32>
    %136 = arith.addf %134, %135 : vector<8x512xf32>
    %137 = vector.extract_strided_slice %136 {offsets = [0, 0], sizes = [8, 128], strides = [1, 1]} : vector<8x512xf32> to vector<8x128xf32>
    %cst_60 = arith.constant 5.000000e-01 : f32
    %138 = vector.broadcast %cst_60 : f32 to vector<8x128xf32>
    %139 = arith.mulf %138, %137 : vector<8x128xf32>
    %140 = math.tanh %139 : vector<8x128xf32>
    %cst_61 = arith.constant 1.000000e+00 : f32
    %141 = vector.broadcast %cst_61 : f32 to vector<8x128xf32>
    %142 = arith.addf %140, %141 : vector<8x128xf32>
    %cst_62 = arith.constant 5.000000e-01 : f32
    %143 = vector.broadcast %cst_62 : f32 to vector<8x128xf32>
    %144 = arith.mulf %143, %142 : vector<8x128xf32>
    %145 = vector.extract_strided_slice %136 {offsets = [0, 128], sizes = [8, 128], strides = [1, 1]} : vector<8x512xf32> to vector<8x128xf32>
    %cst_63 = arith.constant 5.000000e-01 : f32
    %146 = vector.broadcast %cst_63 : f32 to vector<8x128xf32>
    %147 = arith.mulf %146, %145 : vector<8x128xf32>
    %148 = math.tanh %147 : vector<8x128xf32>
    %cst_64 = arith.constant 1.000000e+00 : f32
    %149 = vector.broadcast %cst_64 : f32 to vector<8x128xf32>
    %150 = arith.addf %148, %149 : vector<8x128xf32>
    %cst_65 = arith.constant 5.000000e-01 : f32
    %151 = vector.broadcast %cst_65 : f32 to vector<8x128xf32>
    %152 = arith.mulf %151, %150 : vector<8x128xf32>
    %153 = vector.extract_strided_slice %136 {offsets = [0, 256], sizes = [8, 128], strides = [1, 1]} : vector<8x512xf32> to vector<8x128xf32>
    %154 = math.tanh %153 : vector<8x128xf32>
    %155 = vector.extract_strided_slice %136 {offsets = [0, 384], sizes = [8, 128], strides = [1, 1]} : vector<8x512xf32> to vector<8x128xf32>
    %cst_66 = arith.constant 5.000000e-01 : f32
    %156 = vector.broadcast %cst_66 : f32 to vector<8x128xf32>
    %157 = arith.mulf %156, %155 : vector<8x128xf32>
    %158 = math.tanh %157 : vector<8x128xf32>
    %cst_67 = arith.constant 1.000000e+00 : f32
    %159 = vector.broadcast %cst_67 : f32 to vector<8x128xf32>
    %160 = arith.addf %158, %159 : vector<8x128xf32>
    %cst_68 = arith.constant 5.000000e-01 : f32
    %161 = vector.broadcast %cst_68 : f32 to vector<8x128xf32>
    %162 = arith.mulf %161, %160 : vector<8x128xf32>
    %163 = arith.mulf %152, %125 : vector<8x128xf32>
    %164 = arith.mulf %144, %154 : vector<8x128xf32>
    %165 = arith.addf %163, %164 : vector<8x128xf32>
    %166 = math.tanh %165 : vector<8x128xf32>
    %167 = arith.mulf %162, %166 : vector<8x128xf32>
    %168 = arith.index_cast %c3_i32 : i32 to index
    %c0_69 = arith.constant 0 : index
    %c0_70 = arith.constant 0 : index
    %169 = vector.load %arg13[%168, %c0_69, %c0_70] : memref<8x8x128xf32, #tpu.memory_space<vmem>>, vector<1x8x128xf32>
    %170 = vector.shape_cast %169 : vector<1x8x128xf32> to vector<8x128xf32>
    %171 = vector.shape_cast %167 : vector<8x128xf32> to vector<1x8x128xf32>
    tpu.vector_store %arg13[%168, %c0_69, %c0_70], %171 {strides = array<i32>} : memref<8x8x128xf32, #tpu.memory_space<vmem>>, vector<1x8x128xf32>,
    %c4_i32 = arith.constant 4 : i32
    %172 = arith.index_cast %c4_i32 : i32 to index
    %c0_71 = arith.constant 0 : index
    %c0_72 = arith.constant 0 : index
    %173 = vector.load %arg12[%172, %c0_71, %c0_72] : memref<8x8x512xf32, #tpu.memory_space<vmem>>, vector<1x8x512xf32>
    %174 = vector.shape_cast %173 : vector<1x8x512xf32> to vector<8x512xf32>
    %cst_73 = arith.constant dense<0.000000e+00> : vector<8x512xf32>
    %175 = tpu.matmul %167, %9, %cst_73 {dimension_numbers = #tpu.dot_dimension_numbers<[1], [0], [0], [1], [0, 0, 1, 1], [], []>} : vector<8x128xf32>, vector<128x512xf32>, vector<8x512xf32> -> vector<8x512xf32>
    %176 = arith.addf %174, %175 : vector<8x512xf32>
    %177 = vector.extract_strided_slice %176 {offsets = [0, 0], sizes = [8, 128], strides = [1, 1]} : vector<8x512xf32> to vector<8x128xf32>
    %cst_74 = arith.constant 5.000000e-01 : f32
    %178 = vector.broadcast %cst_74 : f32 to vector<8x128xf32>
    %179 = arith.mulf %178, %177 : vector<8x128xf32>
    %180 = math.tanh %179 : vector<8x128xf32>
    %cst_75 = arith.constant 1.000000e+00 : f32
    %181 = vector.broadcast %cst_75 : f32 to vector<8x128xf32>
    %182 = arith.addf %180, %181 : vector<8x128xf32>
    %cst_76 = arith.constant 5.000000e-01 : f32
    %183 = vector.broadcast %cst_76 : f32 to vector<8x128xf32>
    %184 = arith.mulf %183, %182 : vector<8x128xf32>
    %185 = vector.extract_strided_slice %176 {offsets = [0, 128], sizes = [8, 128], strides = [1, 1]} : vector<8x512xf32> to vector<8x128xf32>
    %cst_77 = arith.constant 5.000000e-01 : f32
    %186 = vector.broadcast %cst_77 : f32 to vector<8x128xf32>
    %187 = arith.mulf %186, %185 : vector<8x128xf32>
    %188 = math.tanh %187 : vector<8x128xf32>
    %cst_78 = arith.constant 1.000000e+00 : f32
    %189 = vector.broadcast %cst_78 : f32 to vector<8x128xf32>
    %190 = arith.addf %188, %189 : vector<8x128xf32>
    %cst_79 = arith.constant 5.000000e-01 : f32
    %191 = vector.broadcast %cst_79 : f32 to vector<8x128xf32>
    %192 = arith.mulf %191, %190 : vector<8x128xf32>
    %193 = vector.extract_strided_slice %176 {offsets = [0, 256], sizes = [8, 128], strides = [1, 1]} : vector<8x512xf32> to vector<8x128xf32>
    %194 = math.tanh %193 : vector<8x128xf32>
    %195 = vector.extract_strided_slice %176 {offsets = [0, 384], sizes = [8, 128], strides = [1, 1]} : vector<8x512xf32> to vector<8x128xf32>
    %cst_80 = arith.constant 5.000000e-01 : f32
    %196 = vector.broadcast %cst_80 : f32 to vector<8x128xf32>
    %197 = arith.mulf %196, %195 : vector<8x128xf32>
    %198 = math.tanh %197 : vector<8x128xf32>
    %cst_81 = arith.constant 1.000000e+00 : f32
    %199 = vector.broadcast %cst_81 : f32 to vector<8x128xf32>
    %200 = arith.addf %198, %199 : vector<8x128xf32>
    %cst_82 = arith.constant 5.000000e-01 : f32
    %201 = vector.broadcast %cst_82 : f32 to vector<8x128xf32>
    %202 = arith.mulf %201, %200 : vector<8x128xf32>
    %203 = arith.mulf %192, %165 : vector<8x128xf32>
    %204 = arith.mulf %184, %194 : vector<8x128xf32>
    %205 = arith.addf %203, %204 : vector<8x128xf32>
    %206 = math.tanh %205 : vector<8x128xf32>
    %207 = arith.mulf %202, %206 : vector<8x128xf32>
    %208 = arith.index_cast %c4_i32 : i32 to index
    %c0_83 = arith.constant 0 : index
    %c0_84 = arith.constant 0 : index
    %209 = vector.load %arg13[%208, %c0_83, %c0_84] : memref<8x8x128xf32, #tpu.memory_space<vmem>>, vector<1x8x128xf32>
    %210 = vector.shape_cast %209 : vector<1x8x128xf32> to vector<8x128xf32>
    %211 = vector.shape_cast %207 : vector<8x128xf32> to vector<1x8x128xf32>
    tpu.vector_store %arg13[%208, %c0_83, %c0_84], %211 {strides = array<i32>} : memref<8x8x128xf32, #tpu.memory_space<vmem>>, vector<1x8x128xf32>,
    %c5_i32 = arith.constant 5 : i32
    %212 = arith.index_cast %c5_i32 : i32 to index
    %c0_85 = arith.constant 0 : index
    %c0_86 = arith.constant 0 : index
    %213 = vector.load %arg12[%212, %c0_85, %c0_86] : memref<8x8x512xf32, #tpu.memory_space<vmem>>, vector<1x8x512xf32>
    %214 = vector.shape_cast %213 : vector<1x8x512xf32> to vector<8x512xf32>
    %cst_87 = arith.constant dense<0.000000e+00> : vector<8x512xf32>
    %215 = tpu.matmul %207, %9, %cst_87 {dimension_numbers = #tpu.dot_dimension_numbers<[1], [0], [0], [1], [0, 0, 1, 1], [], []>} : vector<8x128xf32>, vector<128x512xf32>, vector<8x512xf32> -> vector<8x512xf32>
    %216 = arith.addf %214, %215 : vector<8x512xf32>
    %217 = vector.extract_strided_slice %216 {offsets = [0, 0], sizes = [8, 128], strides = [1, 1]} : vector<8x512xf32> to vector<8x128xf32>
    %cst_88 = arith.constant 5.000000e-01 : f32
    %218 = vector.broadcast %cst_88 : f32 to vector<8x128xf32>
    %219 = arith.mulf %218, %217 : vector<8x128xf32>
    %220 = math.tanh %219 : vector<8x128xf32>
    %cst_89 = arith.constant 1.000000e+00 : f32
    %221 = vector.broadcast %cst_89 : f32 to vector<8x128xf32>
    %222 = arith.addf %220, %221 : vector<8x128xf32>
    %cst_90 = arith.constant 5.000000e-01 : f32
    %223 = vector.broadcast %cst_90 : f32 to vector<8x128xf32>
    %224 = arith.mulf %223, %222 : vector<8x128xf32>
    %225 = vector.extract_strided_slice %216 {offsets = [0, 128], sizes = [8, 128], strides = [1, 1]} : vector<8x512xf32> to vector<8x128xf32>
    %cst_91 = arith.constant 5.000000e-01 : f32
    %226 = vector.broadcast %cst_91 : f32 to vector<8x128xf32>
    %227 = arith.mulf %226, %225 : vector<8x128xf32>
    %228 = math.tanh %227 : vector<8x128xf32>
    %cst_92 = arith.constant 1.000000e+00 : f32
    %229 = vector.broadcast %cst_92 : f32 to vector<8x128xf32>
    %230 = arith.addf %228, %229 : vector<8x128xf32>
    %cst_93 = arith.constant 5.000000e-01 : f32
    %231 = vector.broadcast %cst_93 : f32 to vector<8x128xf32>
    %232 = arith.mulf %231, %230 : vector<8x128xf32>
    %233 = vector.extract_strided_slice %216 {offsets = [0, 256], sizes = [8, 128], strides = [1, 1]} : vector<8x512xf32> to vector<8x128xf32>
    %234 = math.tanh %233 : vector<8x128xf32>
    %235 = vector.extract_strided_slice %216 {offsets = [0, 384], sizes = [8, 128], strides = [1, 1]} : vector<8x512xf32> to vector<8x128xf32>
    %cst_94 = arith.constant 5.000000e-01 : f32
    %236 = vector.broadcast %cst_94 : f32 to vector<8x128xf32>
    %237 = arith.mulf %236, %235 : vector<8x128xf32>
    %238 = math.tanh %237 : vector<8x128xf32>
    %cst_95 = arith.constant 1.000000e+00 : f32
    %239 = vector.broadcast %cst_95 : f32 to vector<8x128xf32>
    %240 = arith.addf %238, %239 : vector<8x128xf32>
    %cst_96 = arith.constant 5.000000e-01 : f32
    %241 = vector.broadcast %cst_96 : f32 to vector<8x128xf32>
    %242 = arith.mulf %241, %240 : vector<8x128xf32>
    %243 = arith.mulf %232, %205 : vector<8x128xf32>
    %244 = arith.mulf %224, %234 : vector<8x128xf32>
    %245 = arith.addf %243, %244 : vector<8x128xf32>
    %246 = math.tanh %245 : vector<8x128xf32>
    %247 = arith.mulf %242, %246 : vector<8x128xf32>
    %248 = arith.index_cast %c5_i32 : i32 to index
    %c0_97 = arith.constant 0 : index
    %c0_98 = arith.constant 0 : index
    %249 = vector.load %arg13[%248, %c0_97, %c0_98] : memref<8x8x128xf32, #tpu.memory_space<vmem>>, vector<1x8x128xf32>
    %250 = vector.shape_cast %249 : vector<1x8x128xf32> to vector<8x128xf32>
    %251 = vector.shape_cast %247 : vector<8x128xf32> to vector<1x8x128xf32>
    tpu.vector_store %arg13[%248, %c0_97, %c0_98], %251 {strides = array<i32>} : memref<8x8x128xf32, #tpu.memory_space<vmem>>, vector<1x8x128xf32>,
    %c6_i32 = arith.constant 6 : i32
    %252 = arith.index_cast %c6_i32 : i32 to index
    %c0_99 = arith.constant 0 : index
    %c0_100 = arith.constant 0 : index
    %253 = vector.load %arg12[%252, %c0_99, %c0_100] : memref<8x8x512xf32, #tpu.memory_space<vmem>>, vector<1x8x512xf32>
    %254 = vector.shape_cast %253 : vector<1x8x512xf32> to vector<8x512xf32>
    %cst_101 = arith.constant dense<0.000000e+00> : vector<8x512xf32>
    %255 = tpu.matmul %247, %9, %cst_101 {dimension_numbers = #tpu.dot_dimension_numbers<[1], [0], [0], [1], [0, 0, 1, 1], [], []>} : vector<8x128xf32>, vector<128x512xf32>, vector<8x512xf32> -> vector<8x512xf32>
    %256 = arith.addf %254, %255 : vector<8x512xf32>
    %257 = vector.extract_strided_slice %256 {offsets = [0, 0], sizes = [8, 128], strides = [1, 1]} : vector<8x512xf32> to vector<8x128xf32>
    %cst_102 = arith.constant 5.000000e-01 : f32
    %258 = vector.broadcast %cst_102 : f32 to vector<8x128xf32>
    %259 = arith.mulf %258, %257 : vector<8x128xf32>
    %260 = math.tanh %259 : vector<8x128xf32>
    %cst_103 = arith.constant 1.000000e+00 : f32
    %261 = vector.broadcast %cst_103 : f32 to vector<8x128xf32>
    %262 = arith.addf %260, %261 : vector<8x128xf32>
    %cst_104 = arith.constant 5.000000e-01 : f32
    %263 = vector.broadcast %cst_104 : f32 to vector<8x128xf32>
    %264 = arith.mulf %263, %262 : vector<8x128xf32>
    %265 = vector.extract_strided_slice %256 {offsets = [0, 128], sizes = [8, 128], strides = [1, 1]} : vector<8x512xf32> to vector<8x128xf32>
    %cst_105 = arith.constant 5.000000e-01 : f32
    %266 = vector.broadcast %cst_105 : f32 to vector<8x128xf32>
    %267 = arith.mulf %266, %265 : vector<8x128xf32>
    %268 = math.tanh %267 : vector<8x128xf32>
    %cst_106 = arith.constant 1.000000e+00 : f32
    %269 = vector.broadcast %cst_106 : f32 to vector<8x128xf32>
    %270 = arith.addf %268, %269 : vector<8x128xf32>
    %cst_107 = arith.constant 5.000000e-01 : f32
    %271 = vector.broadcast %cst_107 : f32 to vector<8x128xf32>
    %272 = arith.mulf %271, %270 : vector<8x128xf32>
    %273 = vector.extract_strided_slice %256 {offsets = [0, 256], sizes = [8, 128], strides = [1, 1]} : vector<8x512xf32> to vector<8x128xf32>
    %274 = math.tanh %273 : vector<8x128xf32>
    %275 = vector.extract_strided_slice %256 {offsets = [0, 384], sizes = [8, 128], strides = [1, 1]} : vector<8x512xf32> to vector<8x128xf32>
    %cst_108 = arith.constant 5.000000e-01 : f32
    %276 = vector.broadcast %cst_108 : f32 to vector<8x128xf32>
    %277 = arith.mulf %276, %275 : vector<8x128xf32>
    %278 = math.tanh %277 : vector<8x128xf32>
    %cst_109 = arith.constant 1.000000e+00 : f32
    %279 = vector.broadcast %cst_109 : f32 to vector<8x128xf32>
    %280 = arith.addf %278, %279 : vector<8x128xf32>
    %cst_110 = arith.constant 5.000000e-01 : f32
    %281 = vector.broadcast %cst_110 : f32 to vector<8x128xf32>
    %282 = arith.mulf %281, %280 : vector<8x128xf32>
    %283 = arith.mulf %272, %245 : vector<8x128xf32>
    %284 = arith.mulf %264, %274 : vector<8x128xf32>
    %285 = arith.addf %283, %284 : vector<8x128xf32>
    %286 = math.tanh %285 : vector<8x128xf32>
    %287 = arith.mulf %282, %286 : vector<8x128xf32>
    %288 = arith.index_cast %c6_i32 : i32 to index
    %c0_111 = arith.constant 0 : index
    %c0_112 = arith.constant 0 : index
    %289 = vector.load %arg13[%288, %c0_111, %c0_112] : memref<8x8x128xf32, #tpu.memory_space<vmem>>, vector<1x8x128xf32>
    %290 = vector.shape_cast %289 : vector<1x8x128xf32> to vector<8x128xf32>
    %291 = vector.shape_cast %287 : vector<8x128xf32> to vector<1x8x128xf32>
    tpu.vector_store %arg13[%288, %c0_111, %c0_112], %291 {strides = array<i32>} : memref<8x8x128xf32, #tpu.memory_space<vmem>>, vector<1x8x128xf32>,
    %c7_i32 = arith.constant 7 : i32
    %292 = arith.index_cast %c7_i32 : i32 to index
    %c0_113 = arith.constant 0 : index
    %c0_114 = arith.constant 0 : index
    %293 = vector.load %arg12[%292, %c0_113, %c0_114] : memref<8x8x512xf32, #tpu.memory_space<vmem>>, vector<1x8x512xf32>
    %294 = vector.shape_cast %293 : vector<1x8x512xf32> to vector<8x512xf32>
    %cst_115 = arith.constant dense<0.000000e+00> : vector<8x512xf32>
    %295 = tpu.matmul %287, %9, %cst_115 {dimension_numbers = #tpu.dot_dimension_numbers<[1], [0], [0], [1], [0, 0, 1, 1], [], []>} : vector<8x128xf32>, vector<128x512xf32>, vector<8x512xf32> -> vector<8x512xf32>
    %296 = arith.addf %294, %295 : vector<8x512xf32>
    %297 = vector.extract_strided_slice %296 {offsets = [0, 0], sizes = [8, 128], strides = [1, 1]} : vector<8x512xf32> to vector<8x128xf32>
    %cst_116 = arith.constant 5.000000e-01 : f32
    %298 = vector.broadcast %cst_116 : f32 to vector<8x128xf32>
    %299 = arith.mulf %298, %297 : vector<8x128xf32>
    %300 = math.tanh %299 : vector<8x128xf32>
    %cst_117 = arith.constant 1.000000e+00 : f32
    %301 = vector.broadcast %cst_117 : f32 to vector<8x128xf32>
    %302 = arith.addf %300, %301 : vector<8x128xf32>
    %cst_118 = arith.constant 5.000000e-01 : f32
    %303 = vector.broadcast %cst_118 : f32 to vector<8x128xf32>
    %304 = arith.mulf %303, %302 : vector<8x128xf32>
    %305 = vector.extract_strided_slice %296 {offsets = [0, 128], sizes = [8, 128], strides = [1, 1]} : vector<8x512xf32> to vector<8x128xf32>
    %cst_119 = arith.constant 5.000000e-01 : f32
    %306 = vector.broadcast %cst_119 : f32 to vector<8x128xf32>
    %307 = arith.mulf %306, %305 : vector<8x128xf32>
    %308 = math.tanh %307 : vector<8x128xf32>
    %cst_120 = arith.constant 1.000000e+00 : f32
    %309 = vector.broadcast %cst_120 : f32 to vector<8x128xf32>
    %310 = arith.addf %308, %309 : vector<8x128xf32>
    %cst_121 = arith.constant 5.000000e-01 : f32
    %311 = vector.broadcast %cst_121 : f32 to vector<8x128xf32>
    %312 = arith.mulf %311, %310 : vector<8x128xf32>
    %313 = vector.extract_strided_slice %296 {offsets = [0, 256], sizes = [8, 128], strides = [1, 1]} : vector<8x512xf32> to vector<8x128xf32>
    %314 = math.tanh %313 : vector<8x128xf32>
    %315 = vector.extract_strided_slice %296 {offsets = [0, 384], sizes = [8, 128], strides = [1, 1]} : vector<8x512xf32> to vector<8x128xf32>
    %cst_122 = arith.constant 5.000000e-01 : f32
    %316 = vector.broadcast %cst_122 : f32 to vector<8x128xf32>
    %317 = arith.mulf %316, %315 : vector<8x128xf32>
    %318 = math.tanh %317 : vector<8x128xf32>
    %cst_123 = arith.constant 1.000000e+00 : f32
    %319 = vector.broadcast %cst_123 : f32 to vector<8x128xf32>
    %320 = arith.addf %318, %319 : vector<8x128xf32>
    %cst_124 = arith.constant 5.000000e-01 : f32
    %321 = vector.broadcast %cst_124 : f32 to vector<8x128xf32>
    %322 = arith.mulf %321, %320 : vector<8x128xf32>
    %323 = arith.mulf %312, %285 : vector<8x128xf32>
    %324 = arith.mulf %304, %314 : vector<8x128xf32>
    %325 = arith.addf %323, %324 : vector<8x128xf32>
    %326 = math.tanh %325 : vector<8x128xf32>
    %327 = arith.mulf %322, %326 : vector<8x128xf32>
    %328 = arith.index_cast %c7_i32 : i32 to index
    %c0_125 = arith.constant 0 : index
    %c0_126 = arith.constant 0 : index
    %329 = vector.load %arg13[%328, %c0_125, %c0_126] : memref<8x8x128xf32, #tpu.memory_space<vmem>>, vector<1x8x128xf32>
    %330 = vector.shape_cast %329 : vector<1x8x128xf32> to vector<8x128xf32>
    %331 = vector.shape_cast %327 : vector<8x128xf32> to vector<1x8x128xf32>
    tpu.vector_store %arg13[%328, %c0_125, %c0_126], %331 {strides = array<i32>} : memref<8x8x128xf32, #tpu.memory_space<vmem>>, vector<1x8x128xf32>,
    %c8_i32 = arith.constant 8 : i32
    %c0_127 = arith.constant 0 : index
    %c0_128 = arith.constant 0 : index
    %332 = vector.load %arg10[%c0_127, %c0_128] : memref<8x128xf32, #tpu.memory_space<vmem>>, vector<8x128xf32>
    tpu.vector_store %arg10[%c0_127, %c0_128], %327 {strides = array<i32>} : memref<8x128xf32, #tpu.memory_space<vmem>>, vector<8x128xf32>,
    %c0_129 = arith.constant 0 : index
    %c0_130 = arith.constant 0 : index
    %333 = vector.load %arg11[%c0_129, %c0_130] : memref<8x128xf32, #tpu.memory_space<vmem>>, vector<8x128xf32>
    tpu.vector_store %arg11[%c0_129, %c0_130], %325 {strides = array<i32>} : memref<8x128xf32, #tpu.memory_space<vmem>>, vector<8x128xf32>,
    %c0_131 = arith.constant 0 : index
    %c0_132 = arith.constant 0 : index
    %c0_133 = arith.constant 0 : index
    %334 = vector.load %arg13[%c0_131, %c0_132, %c0_133] : memref<8x8x128xf32, #tpu.memory_space<vmem>>, vector<8x8x128xf32>
    %335 = vector.shape_cast %334 : vector<8x8x128xf32> to vector<64x128xf32>
    %c0_134 = arith.constant 0 : index
    %c0_135 = arith.constant 0 : index
    %336 = vector.load %arg5[%c0_134, %c0_135] : memref<128x128xf32, #tpu.memory_space<vmem>>, vector<128x128xf32>
    %cst_136 = arith.constant dense<0.000000e+00> : vector<64x128xf32>
    %337 = tpu.matmul %335, %336, %cst_136 {dimension_numbers = #tpu.dot_dimension_numbers<[1], [0], [0], [1], [0, 0, 1, 1], [], []>} : vector<64x128xf32>, vector<128x128xf32>, vector<64x128xf32> -> vector<64x128xf32>
    %c0_137 = arith.constant 0 : index
    %c0_138 = arith.constant 0 : index
    %338 = vector.load %arg6[%c0_137, %c0_138] : memref<1x128xf32, #tpu.memory_space<vmem>>, vector<1x128xf32>
    %339 = vector.broadcast %338 : vector<1x128xf32> to vector<64x128xf32>
    %340 = arith.addf %337, %339 : vector<64x128xf32>
    %341 = vector.shape_cast %340 : vector<64x128xf32> to vector<8x8x128xf32>
    %c0_139 = arith.constant 0 : index
    %c0_140 = arith.constant 0 : index
    %c0_141 = arith.constant 0 : index
    %342 = vector.load %arg9[%c0_139, %c0_140, %c0_141] : memref<8x8x128xf32, #tpu.memory_space<vmem>>, vector<8x8x128xf32>
    tpu.vector_store %arg9[%c0_139, %c0_140, %c0_141], %341 {strides = array<i32>} : memref<8x8x128xf32, #tpu.memory_space<vmem>>, vector<8x8x128xf32>,
    return
  }
  func.func @transform_0(%arg0: i32) -> (i32, i32, i32) {
    %c0_i32 = arith.constant 0 : i32
    %c0_i32_0 = arith.constant 0 : i32
    %c0_i32_1 = arith.constant 0 : i32
    return %c0_i32, %arg0, %c0_i32_0 : i32, i32, i32
  }
  func.func @transform_1(%arg0: i32) -> (i32, i32) {
    %c0_i32 = arith.constant 0 : i32
    %c0_i32_0 = arith.constant 0 : i32
    %c0_i32_1 = arith.constant 0 : i32
    return %c0_i32, %c0_i32_0 : i32, i32
  }
  func.func @transform_2(%arg0: i32) -> (i32, i32) {
    %c0_i32 = arith.constant 0 : i32
    %c0_i32_0 = arith.constant 0 : i32
    %c0_i32_1 = arith.constant 0 : i32
    return %c0_i32, %c0_i32_0 : i32, i32
  }
  func.func @transform_3(%arg0: i32) -> (i32, i32) {
    %c0_i32 = arith.constant 0 : i32
    %c0_i32_0 = arith.constant 0 : i32
    %c0_i32_1 = arith.constant 0 : i32
    return %c0_i32, %c0_i32_0 : i32, i32
  }
  func.func @transform_4(%arg0: i32) -> (i32, i32) {
    %c0_i32 = arith.constant 0 : i32
    %c0_i32_0 = arith.constant 0 : i32
    %c0_i32_1 = arith.constant 0 : i32
    return %c0_i32, %c0_i32_0 : i32, i32
  }
  func.func @transform_5(%arg0: i32) -> (i32, i32) {
    %c0_i32 = arith.constant 0 : i32
    %c0_i32_0 = arith.constant 0 : i32
    %c0_i32_1 = arith.constant 0 : i32
    return %c0_i32, %c0_i32_0 : i32, i32
  }
  func.func @transform_6(%arg0: i32) -> (i32, i32) {
    %c0_i32 = arith.constant 0 : i32
    %c0_i32_0 = arith.constant 0 : i32
    return %arg0, %c0_i32 : i32, i32
  }
  func.func @transform_7(%arg0: i32) -> (i32, i32) {
    %c0_i32 = arith.constant 0 : i32
    %c0_i32_0 = arith.constant 0 : i32
    return %arg0, %c0_i32 : i32, i32
  }
  func.func @transform_8(%arg0: i32) -> (i32, i32, i32) {
    %c0_i32 = arith.constant 0 : i32
    %c0_i32_0 = arith.constant 0 : i32
    %c0_i32_1 = arith.constant 0 : i32
    return %c0_i32, %arg0, %c0_i32_0 : i32, i32, i32
  }
  func.func @transform_9(%arg0: i32) -> (i32, i32) {
    %c0_i32 = arith.constant 0 : i32
    %c0_i32_0 = arith.constant 0 : i32
    return %arg0, %c0_i32 : i32, i32
  }
  func.func @transform_10(%arg0: i32) -> (i32, i32) {
    %c0_i32 = arith.constant 0 : i32
    %c0_i32_0 = arith.constant 0 : i32
    return %arg0, %c0_i32 : i32, i32
  }
}

</mosaic_0001>

<bundles_post_ra>
// kernel: tpu_custom_call.1
= control target key start
LH: loop header
LB: loop body
LE: loop exit
PB: predicated region body
PF: predicated region fallthrough
CT: control target
= control target key end

     0   :  { %16 = vsyncpa [#allocation5], 0  ;;  %s3019_s0 = inlined_call_operand.hbm [shape: f32[8,8,128], index: 0, kind: input, shape index: {}]   ;;  %s3020_s1 = inlined_call_operand.hbm [shape: f32[128,512], index: 1, kind: input, shape index: {}]   ;;  %s3021_s2 = inlined_call_operand.hbm [shape: f32[1,512], index: 2, kind: input, shape index: {}]   ;;  %s3022_s3 = inlined_call_operand.hbm [shape: f32[128,512], index: 3, kind: input, shape index: {}]   ;;  %s3023_s4 = inlined_call_operand.hbm [shape: f32[128,128], index: 4, kind: input, shape index: {}]   ;;  %s3024_s5 = inlined_call_operand.vmem [shape: f32[1,128], index: 5, kind: input, shape index: {}]   ;;  %s3025_s6 = inlined_call_operand.hbm [shape: f32[8,128], index: 6, kind: input, shape index: {}]   ;;  %s3026_s7 = inlined_call_operand.hbm [shape: f32[8,128], index: 7, kind: input, shape index: {}]   ;;  %s3027_s8 = inlined_call_operand.hbm [shape: f32[8,8,128], index: 8, kind: output, shape index: {0}]   ;;  %s3028_s9 = inlined_call_operand.hbm [shape: f32[8,128], index: 9, kind: output, shape index: {1}]   ;;  %s3029_s10 = inlined_call_operand.hbm [shape: f32[8,128], index: 10, kind: output, shape index: {2}]  }
   0x1   :  { %17 = vsyncpa [#allocation8], 0 }
   0x2   :  { %18 = vsyncpa [#allocation11], 0 }
   0x3   :  { %19 = vsyncpa [#allocation14], 0 }
   0x4   :  { %20 = vsyncpa [#allocation6], 0  ;;  %s39_s15 = sshll.u32 %s3020_s1, 4  ;;  %s40_s15 = int_to_ptr.hbm [resolvable:$true] %s39_s15 }
   0x5   :  { %21 = vsyncpa [#allocation18], 0  ;;  %s1910_s16 = smov [#allocation7]   ;;  %s63_s20 = sshll.u32 %s3022_s3, 4  ;;  %s64_s20 = int_to_ptr.hbm [resolvable:$true] %s63_s20 }
   0x6   :  { %s41_s17 = sshll.u32 %s1910_s16, 4  ;;  %s1911_s21 = smov 512   ;;  %s42_s17 = int_to_ptr.vmem [resolvable:$true] %s41_s17 }
   0x7   :  { %s1912_s22 = smov 32   ;;  %s1913_s23 = smov [#allocation10]  }
   0x8   :  { %47 = dma.hbm_to_vmem [thread:$0]  %s40_s15, 8192, %s42_s17, [#allocation8], %s1911_s21, %s1911_s21, %s1912_s22  }
   0x9   :  { %s65_s24 = sshll.u32 %s1913_s23, 4  ;;  %s92_s27 = sshll.u32 %s3025_s6, 4  ;;  %s66_s24 = int_to_ptr.vmem [resolvable:$true] %s65_s24  ;;  %s93_s27 = int_to_ptr.hbm [resolvable:$true] %s92_s27 }
   0xa   :  { %71 = dma.hbm_to_vmem [thread:$0]  %s64_s20, 8192, %s66_s24, [#allocation11], %s1911_s21, %s1911_s21, %s1912_s22  }
   0xb   :  { %s26_s29 = sshll.u32 %s3019_s0, 4  ;;  %s1914_s30 = smov [#allocation13]   ;;  %s27_s29 = int_to_ptr.hbm [resolvable:$true] %s26_s29 }
   0xc   :  { %s94_s11 = sshll.u32 %s1914_s30, 4  ;;  %s1915_s3 = smov [#allocation4]   ;;  %s95_s11 = int_to_ptr.vmem [resolvable:$true] %s94_s11 }
   0xd   :  { %97 = dma.hbm_to_vmem [thread:$0]  %s93_s27, 128, %s95_s11, [#allocation14]  }
   0xe   :  { %s28_s12 = sshll.u32 %s1915_s3, 4  ;;  %s1916_s13 = smov 128   ;;  %s29_s12 = int_to_ptr.vmem [resolvable:$true] %s28_s12 }
   0xf   :  { %s1917_s14 = smov 8   ;;  %s53_s16 = sshll.u32 %s3021_s2, 4  ;;  %s54_s16 = int_to_ptr.hbm [resolvable:$true] %s53_s16 }
  0x10   :  { %34 = dma.hbm_to_vmem [thread:$0]  %s27_s29, 1024, %s29_s12, [#allocation5], %s1916_s13, %s1916_s13, %s1917_s14  }
  0x11   :  { %s1918_s0 = smov [#allocation9]   ;;  %s76_s20 = sshll.u32 %s3023_s4, 4  ;;  %s77_s20 = int_to_ptr.hbm [resolvable:$true] %s76_s20 }
  0x12   :  { %s55_s17 = sshll.u32 %s1918_s0, 4  ;;  %s1919_s21 = smov [#allocation12]   ;;  %s56_s17 = int_to_ptr.vmem [resolvable:$true] %s55_s17 }
  0x13   :  { %58 = dma.hbm_to_vmem [thread:$0]  %s54_s16, 64, %s56_s17, [#allocation8]  }
  0x14   :  { %s78_s22 = sshll.u32 %s1919_s21, 4  ;;  %s103_s25 = sshll.u32 %s3026_s7, 4  ;;  %s79_s22 = int_to_ptr.vmem [resolvable:$true] %s78_s22  ;;  %s104_s25 = int_to_ptr.hbm [resolvable:$true] %s103_s25 }
  0x15   :  { %84 = dma.hbm_to_vmem [thread:$0]  %s77_s20, 2048, %s79_s22, [#allocation11], %s1916_s13, %s1916_s13, %s1917_s14  }
  0x16   :  { %s1920_s2 = smov [#allocation15]  }
  0x17   :  { %s105_s26 = sshll.u32 %s1920_s2, 4  ;;  %s106_s26 = int_to_ptr.vmem [resolvable:$true] %s105_s26 }
  0x18   :  { %108 = dma.hbm_to_vmem [thread:$0]  %s104_s25, 128, %s106_s26, [#allocation14]  }
  0x19   :  { %1898 = dma.done.wait [#allocation5], 1024  }
  0x1a   :  { %1899 = vsyncadd [#allocation5], 4294966272 }
  0x1b   :  { %1900 = dma.done.wait [#allocation8], 8256  }
  0x1c   :  { %1901 = vsyncadd [#allocation8], 4294959040 }
  0x1d   :  { %1902 = dma.done.wait [#allocation11], 10240  }
  0x1e   :  { %1903 = vsyncadd [#allocation11], 4294957056 }
  0x1f   :  { %1904 = dma.done.wait [#allocation14], 256  }
  0x20   :  { %1905 = vsyncadd [#allocation14], 4294967040  ;;  %v205_v0 = vld [vmem:[#allocation7 + $0x1e0] sm:$0xff]  ;;  %v208_v1 = vld [vmem:[#allocation7 + $0x1f8] sm:$0xff]  ;;  %s1450_s29 = sshll.u32 %s3028_s9, 4  ;;  %s1922_s30 = smov [#allocation19]   ;;  %s1451_s29 = int_to_ptr.hbm [resolvable:$true] %s1450_s29 }
  0x21   :  { %v201_v2 = vld [vmem:[#allocation7 + $0x1c0] sm:$0xff]  ;;  %219 = vmatpush.msra.mxu1 %v205_v0  ;;  %1483 = vmatpush.msra.mxu2 %v205_v0  ;;  %v204_v3 = vld [vmem:[#allocation7 + $0x1d8] sm:$0xff]  ;;  %v206_v49 = vld [vmem:[#allocation7 + $0x1e8] sm:$0xff]  ;;  %s1459_s11 = sshll.u32 %s1922_s30, 4  ;;  %s1461_s6 = sshll.u32 %s3029_s10, 4  ;;  %s1460_s11 = int_to_ptr.vmem [resolvable:$true] %s1459_s11  ;;  %s1462_s6 = int_to_ptr.hbm [resolvable:$true] %s1461_s6 }
  0x22   :  { %v2006_v4 = vld [vmem:[#allocation10 + $0x1e0] sm:$0xff]  ;;  %342 = vmatpush.msra.mxu3 %v208_v1  ;;  %v200_v7 = vld [vmem:[#allocation7 + $0x1b8] sm:$0xff]  ;;  %v207_v50 = vld [vmem:[#allocation7 + $0x1f0] sm:$0xff]  ;;  %s1923_s9 = smov [#allocation16]   ;;  %s1436_s0 = sshll.u32 %s3027_s8, 4  ;;  %s1437_s0 = int_to_ptr.hbm [resolvable:$true] %s1436_s0 }
  0x23   :  { %485 = vmatpush.msra.mxu0 %v2006_v4  ;;  %v197_v5 = vld [vmem:[#allocation7 + $0x1a0] sm:$0xff]  ;;  %220 = vmatpush.msra.mxu1 %v201_v2  ;;  %v196_v10 = vld [vmem:[#allocation7 + $0x198] sm:$0xff]  ;;  %v202_v52 = vld [vmem:[#allocation7 + $0x1c8] sm:$0xff]  ;;  %s1434_s15 = sshll.u32 %s1923_s9, 4  ;;  %s1435_s15 = int_to_ptr.vmem [resolvable:$true] %s1434_s15 }
  0x24   :  { %v2009_v6 = vld [vmem:[#allocation10 + $0x1c0] sm:$0xff]  ;;  %1484 = vmatpush.msra.mxu2 %v201_v2  ;;  %343 = vmatpush.msra.mxu3 %v204_v3  ;;  %v192_v13 = vld [vmem:[#allocation7 + $0x178] sm:$0xff]  ;;  %v203_v53 = vld [vmem:[#allocation7 + $0x1d0] sm:$0xff] }
  0x25   :  { %v2011_v8 = vld [vmem:[#allocation10 + $0x1a0] sm:$0xff]  ;;  %486 = vmatpush.msra.mxu0 %v2009_v6  ;;  %221 = vmatpush.msra.mxu1 %v197_v5  ;;  %v188_v16 = vld [vmem:[#allocation7 + $0x158] sm:$0xff]  ;;  %v199_v57 = vld [vmem:[#allocation7 + $0x1b0] sm:$0xff] }
  0x26   :  { %v193_v9 = vld [vmem:[#allocation7 + $0x180] sm:$0xff]  ;;  %1485 = vmatpush.msra.mxu2 %v197_v5  ;;  %344 = vmatpush.msra.mxu3 %v200_v7  ;;  %v184_v19 = vld [vmem:[#allocation7 + $0x138] sm:$0xff]  ;;  %v198_v55 = vld [vmem:[#allocation7 + $0x1a8] sm:$0xff] }
  0x27   :  { %v2014_v11 = vld [vmem:[#allocation10 + $0x180] sm:$0xff]  ;;  %487 = vmatpush.msra.mxu0 %v2011_v8  ;;  %222 = vmatpush.msra.mxu1 %v193_v9  ;;  %v180_v22 = vld [vmem:[#allocation7 + $0x118] sm:$0xff]  ;;  %v195_v60 = vld [vmem:[#allocation7 + $0x190] sm:$0xff] }
  0x28   :  { %v189_v12 = vld [vmem:[#allocation7 + $0x160] sm:$0xff]  ;;  %1486 = vmatpush.msra.mxu2 %v193_v9  ;;  %345 = vmatpush.msra.mxu3 %v196_v10  ;;  %v176_v25 = vld [vmem:[#allocation7 + $0xf8] sm:$0xff]  ;;  %v194_v58 = vld [vmem:[#allocation7 + $0x188] sm:$0xff] }
  0x29   :  { %v2017_v14 = vld [vmem:[#allocation10 + $0x160] sm:$0xff]  ;;  %488 = vmatpush.msra.mxu0 %v2014_v11  ;;  %223 = vmatpush.msra.mxu1 %v189_v12  ;;  %v172_v28 = vld [vmem:[#allocation7 + $0xd8] sm:$0xff]  ;;  %v191_v0 = vld [vmem:[#allocation7 + $0x170] sm:$0xff] }
  0x2a   :  { %v185_v15 = vld [vmem:[#allocation7 + $0x140] sm:$0xff]  ;;  %1487 = vmatpush.msra.mxu2 %v189_v12  ;;  %346 = vmatpush.msra.mxu3 %v192_v13  ;;  %v168_v31 = vld [vmem:[#allocation7 + $0xb8] sm:$0xff]  ;;  %v2068_v61 = vld [vmem:[#allocation4 + $0x8] sm:$0xff] }
  0x2b   :  { %v2020_v17 = vld [vmem:[#allocation10 + $0x140] sm:$0xff]  ;;  %489 = vmatpush.msra.mxu0 %v2017_v14  ;;  %224 = vmatpush.msra.mxu1 %v185_v15  ;;  %v164_v34 = vld [vmem:[#allocation7 + $0x98] sm:$0xff]  ;;  %v187_v3 = vld [vmem:[#allocation7 + $0x150] sm:$0xff] }
  0x2c   :  { %v181_v18 = vld [vmem:[#allocation7 + $0x120] sm:$0xff]  ;;  %1488 = vmatpush.msra.mxu2 %v185_v15  ;;  %347 = vmatpush.msra.mxu3 %v188_v16  ;;  %v160_v37 = vld [vmem:[#allocation7 + $0x78] sm:$0xff]  ;;  %v2071_v62 = vld [vmem:[#allocation4 + $0x28] sm:$0xff] }
  0x2d   :  { %v2023_v20 = vld [vmem:[#allocation10 + $0x120] sm:$0xff]  ;;  %490 = vmatpush.msra.mxu0 %v2020_v17  ;;  %225 = vmatpush.msra.mxu1 %v181_v18  ;;  %v156_v40 = vld [vmem:[#allocation7 + $0x58] sm:$0xff]  ;;  %v183_v9 = vld [vmem:[#allocation7 + $0x130] sm:$0xff] }
  0x2e   :  { %v177_v21 = vld [vmem:[#allocation7 + $0x100] sm:$0xff]  ;;  %1489 = vmatpush.msra.mxu2 %v181_v18  ;;  %348 = vmatpush.msra.mxu3 %v184_v19  ;;  %v152_v43 = vld [vmem:[#allocation7 + $0x38] sm:$0xff]  ;;  %v190_v63 = vld [vmem:[#allocation7 + $0x168] sm:$0xff] }
  0x2f   :  { %v2026_v23 = vld [vmem:[#allocation10 + $0x100] sm:$0xff]  ;;  %491 = vmatpush.msra.mxu0 %v2023_v20  ;;  %226 = vmatpush.msra.mxu1 %v177_v21  ;;  %v148_v46 = vld [vmem:[#allocation7 + $0x18] sm:$0xff]  ;;  %v179_v13 = vld [vmem:[#allocation7 + $0x110] sm:$0xff] }
  0x30   :  { %v173_v24 = vld [vmem:[#allocation7 + $0xe0] sm:$0xff]  ;;  %1490 = vmatpush.msra.mxu2 %v177_v21  ;;  %349 = vmatpush.msra.mxu3 %v180_v22  ;;  %v186_v1 = vld [vmem:[#allocation7 + $0x148] sm:$0xff]  ;;  %v2086_v15 = vld [vmem:[#allocation4 + $0x10] sm:$0xff] }
  0x31   :  { %v2029_v26 = vld [vmem:[#allocation10 + $0xe0] sm:$0xff]  ;;  %492 = vmatpush.msra.mxu0 %v2026_v23  ;;  %227 = vmatpush.msra.mxu1 %v173_v24  ;;  %v2062_v56 = vld [vmem:[#allocation10 + $0x1f8] sm:$0xff]  ;;  %v2089_v16 = vld [vmem:[#allocation4 + $0x30] sm:$0xff] }
  0x32   :  { %3089 = vst [vmem:[#allocation26_spill] sm:$0xff] %v2029_v26  ;;  %v169_v27 = vld [vmem:[#allocation7 + $0xc0] sm:$0xff]  ;;  %1491 = vmatpush.msra.mxu2 %v173_v24  ;;  %350 = vmatpush.msra.mxu3 %v176_v25  ;;  %v182_v5 = vld [vmem:[#allocation7 + $0x128] sm:$0xff]  ;;  %v175_v19 = vld [vmem:[#allocation7 + $0xf0] sm:$0xff] }
  0x33   :  { %v2032_v29 = vld [vmem:[#allocation10 + $0xc0] sm:$0xff]  ;;  %493 = vmatpush.msra.mxu0 %v2029_v26  ;;  %228 = vmatpush.msra.mxu1 %v169_v27  ;;  %v2066_v59 = vld [vmem:[#allocation10 + $0x1d8] sm:$0xff]  ;;  %v171_v24 = vld [vmem:[#allocation7 + $0xd0] sm:$0xff] }
  0x34   :  { %3090 = vst [vmem:[#allocation27_spill] sm:$0xff] %v2032_v29  ;;  %v165_v30 = vld [vmem:[#allocation7 + $0xa0] sm:$0xff]  ;;  %1492 = vmatpush.msra.mxu2 %v169_v27  ;;  %351 = vmatpush.msra.mxu3 %v172_v28  ;;  %v178_v10 = vld [vmem:[#allocation7 + $0x108] sm:$0xff]  ;;  %v167_v28 = vld [vmem:[#allocation7 + $0xb0] sm:$0xff] }
  0x35   :  { %v2035_v32 = vld [vmem:[#allocation10 + $0xa0] sm:$0xff]  ;;  %494 = vmatpush.msra.mxu0 %v2032_v29  ;;  %229 = vmatpush.msra.mxu1 %v165_v30  ;;  %v2076_v2 = vld [vmem:[#allocation10 + $0x1b8] sm:$0xff] }
  0x36   :  { %3091 = vst [vmem:[#allocation28_spill] sm:$0xff] %v2035_v32  ;;  %v161_v33 = vld [vmem:[#allocation7 + $0x80] sm:$0xff]  ;;  %1493 = vmatpush.msra.mxu2 %v165_v30  ;;  %352 = vmatpush.msra.mxu3 %v168_v31  ;;  %v174_v18 = vld [vmem:[#allocation7 + $0xe8] sm:$0xff] }
  0x37   :  { %v2038_v35 = vld [vmem:[#allocation10 + $0x80] sm:$0xff]  ;;  %495 = vmatpush.msra.mxu0 %v2035_v32  ;;  %230 = vmatpush.msra.mxu1 %v161_v33  ;;  %v2080_v7 = vld [vmem:[#allocation10 + $0x198] sm:$0xff] }
  0x38   :  { %3092 = vst [vmem:[#allocation29_spill] sm:$0xff] %v2038_v35  ;;  %v157_v36 = vld [vmem:[#allocation7 + $0x60] sm:$0xff]  ;;  %1494 = vmatpush.msra.mxu2 %v161_v33  ;;  %353 = vmatpush.msra.mxu3 %v164_v34  ;;  %v170_v21 = vld [vmem:[#allocation7 + $0xc8] sm:$0xff]  ;;  %v163_v33 = vld [vmem:[#allocation7 + $0x90] sm:$0xff] }
  0x39   :  { %v2041_v38 = vld [vmem:[#allocation10 + $0x60] sm:$0xff]  ;;  %496 = vmatpush.msra.mxu0 %v2038_v35  ;;  %231 = vmatpush.msra.mxu1 %v157_v36  ;;  %v2083_v12 = vld [vmem:[#allocation10 + $0x178] sm:$0xff] }
  0x3a   :  { %3093 = vst [vmem:[#allocation30_spill] sm:$0xff] %v2041_v38  ;;  %v153_v39 = vld [vmem:[#allocation7 + $0x40] sm:$0xff]  ;;  %1495 = vmatpush.msra.mxu2 %v157_v36  ;;  %354 = vmatpush.msra.mxu3 %v160_v37  ;;  %v166_v25 = vld [vmem:[#allocation7 + $0xa8] sm:$0xff]  ;;  %v2104_v34 = vld [vmem:[#allocation4 + $0x18] sm:$0xff] }
  0x3b   :  { %v2044_v41 = vld [vmem:[#allocation10 + $0x40] sm:$0xff]  ;;  %497 = vmatpush.msra.mxu0 %v2041_v38  ;;  %232 = vmatpush.msra.mxu1 %v153_v39  ;;  %v2094_v22 = vld [vmem:[#allocation10 + $0x158] sm:$0xff] }
  0x3c   :  { %v149_v42 = vld [vmem:[#allocation7 + $0x20] sm:$0xff]  ;;  %1496 = vmatpush.msra.mxu2 %v153_v39  ;;  %355 = vmatpush.msra.mxu3 %v156_v40  ;;  %v162_v30 = vld [vmem:[#allocation7 + $0x88] sm:$0xff]  ;;  %v2107_v36 = vld [vmem:[#allocation4 + $0x38] sm:$0xff] }
  0x3d   :  { %v2047_v44 = vld [vmem:[#allocation10 + $0x20] sm:$0xff]  ;;  %498 = vmatpush.msra.mxu0 %v2044_v41  ;;  %233 = vmatpush.msra.mxu1 %v149_v42  ;;  %v2098_v27 = vld [vmem:[#allocation10 + $0x138] sm:$0xff]  ;;  %v159_v39 = vld [vmem:[#allocation7 + $0x70] sm:$0xff] }
  0x3e   :  { %3094 = vst [vmem:[#allocation31_spill] sm:$0xff] %v2047_v44  ;;  %v145_v45 = vld [vmem:[#allocation7] sm:$0xff]  ;;  %1497 = vmatpush.msra.mxu2 %v149_v42  ;;  %356 = vmatpush.msra.mxu3 %v152_v43  ;;  %v158_v37 = vld [vmem:[#allocation7 + $0x68] sm:$0xff]  ;;  %v155_v43 = vld [vmem:[#allocation7 + $0x50] sm:$0xff] }
  0x3f   :  { %v2050_v47 = vld [vmem:[#allocation4] sm:$0xff]  ;;  %499 = vmatpush.msra.mxu0 %v2047_v44  ;;  %234 = vmatpush.msra.mxu1 %v145_v45  ;;  %v154_v40 = vld [vmem:[#allocation7 + $0x48] sm:$0xff] }
  0x40   :  { %v2053_v48 = vld [vmem:[#allocation4 + $0x20] sm:$0xff]  ;;  %1498 = vmatpush.msra.mxu2 %v145_v45  ;;  %357 = vmatpush.msra.mxu3 %v148_v46  ;;  %v150_v45 = vld [vmem:[#allocation7 + $0x28] sm:$0xff] }
  0x41   :  { %235 = vmatmul.f32.vlgmr.msra.gmra.mxu1 %v2050_v47  ;;  %v2056_v51 = vld [vmem:[#allocation10] sm:$0xff]  ;;  %247 = vmatmul.f32.vlgmr.msra.gmra.mxu2 %v2053_v48  ;;  %v2101_v31 = vld [vmem:[#allocation10 + $0x118] sm:$0xff] }
  0x42   :  { %3095 = vst [vmem:[#allocation32_spill] sm:$0xff] %v2056_v51  ;;  %260 = vmatpush.msrb.mxu1 %v206_v49  ;;  %v2059_v54 = vld [vmem:[#allocation13] sm:$0xff]  ;;  %301 = vmatpush.msrb.mxu2 %v207_v50  ;;  %v2112_v42 = vld [vmem:[#allocation10 + $0xf8] sm:$0xff]  ;;  %v151_v49 = vld [vmem:[#allocation7 + $0x30] sm:$0xff] }
  0x43   :  { %358 = vmatmul.f32.vlgmr.msra.gmra.mxu3 %v2050_v47  ;;  %500 = vmatpush.msra.mxu0 %v2056_v51  ;;  %v2116_v46 = vld [vmem:[#allocation10 + $0xd8] sm:$0xff]  ;;  %v146_v50 = vld [vmem:[#allocation7 + $0x8] sm:$0xff] }
  0x44   :  { %261 = vmatpush.msrb.mxu1 %v202_v52  ;;  %302 = vmatpush.msrb.mxu2 %v203_v53  ;;  %v2119_v52 = vld [vmem:[#allocation10 + $0xb8] sm:$0xff]  ;;  %v147_v53 = vld [vmem:[#allocation7 + $0x10] sm:$0xff] }
  0x45   :  { %501 = vmatmul.f32.vlgmr.msra.gmra.mxu0 %v2059_v54  ;;  %545 = vmatpush.msrb.mxu3 %v2062_v56 }
  0x46   :  { %262 = vmatpush.msrb.mxu1 %v198_v55  ;;  %303 = vmatpush.msrb.mxu2 %v199_v57  ;;  %v2123_v55 = vld [vmem:[#allocation10 + $0x1e8] sm:$0xff]  ;;  %v2126_v57 = vld [vmem:[#allocation10 + $0x1f0] sm:$0xff] }
  0x47   :  { %593 = vmatpush.msrb.mxu0 %v2006_v4  ;;  %546 = vmatpush.msrb.mxu3 %v2066_v59 }
  0x48   :  { %263 = vmatpush.msrb.mxu1 %v194_v58  ;;  %304 = vmatpush.msrb.mxu2 %v195_v60  ;;  %v2130_v58 = vld [vmem:[#allocation10 + $0x1c8] sm:$0xff]  ;;  %v2132_v60 = vld [vmem:[#allocation10 + $0x98] sm:$0xff] }
  0x49   :  { %238 = vmatmul.f32.gmra.mxu1 %v2068_v61  ;;  %250 = vmatmul.f32.gmra.mxu2 %v2071_v62  ;;  %3096 = vst [vmem:[#allocation33_spill] sm:$0xff] %v2132_v60 }
  0x4a   :  { %264 = vmatpush.msrb.mxu1 %v190_v63  ;;  %305 = vmatpush.msrb.mxu2 %v191_v0  ;;  %v2136_v63 = vld [vmem:[#allocation10 + $0x1d0] sm:$0xff]  ;;  %v2140_v0 = vld [vmem:[#allocation10 + $0x1a8] sm:$0xff] }
  0x4b   :  { %361 = vmatmul.f32.gmra.mxu3 %v2068_v61  ;;  %594 = vmatpush.msrb.mxu0 %v2009_v6 }
  0x4c   :  { %265 = vmatpush.msrb.mxu1 %v186_v1  ;;  %547 = vmatpush.msrb.mxu3 %v2076_v2  ;;  %v2142_v1 = vld [vmem:[#allocation10 + $0x78] sm:$0xff] }
  0x4d   :  { %306 = vmatpush.msrb.mxu2 %v187_v3  ;;  %595 = vmatpush.msrb.mxu0 %v2011_v8  ;;  %3097 = vst [vmem:[#allocation34_spill] sm:$0xff] %v2142_v1  ;;  %v2145_v3 = vld [vmem:[#allocation10 + $0x1b0] sm:$0xff] }
  0x4e   :  { %266 = vmatpush.msrb.mxu1 %v182_v5  ;;  %548 = vmatpush.msrb.mxu3 %v2080_v7  ;;  %v2151_v5 = vld [vmem:[#allocation10 + $0x58] sm:$0xff] }
  0x4f   :  { %307 = vmatpush.msrb.mxu2 %v183_v9  ;;  %596 = vmatpush.msrb.mxu0 %v2014_v11  ;;  %3098 = vst [vmem:[#allocation35_spill] sm:$0xff] %v2151_v5  ;;  %v2155_v9 = vld [vmem:[#allocation10 + $0x190] sm:$0xff] }
  0x50   :  { %267 = vmatpush.msrb.mxu1 %v178_v10  ;;  %549 = vmatpush.msrb.mxu3 %v2083_v12  ;;  %v2159_v10 = vld [vmem:[#allocation10 + $0x168] sm:$0xff] }
  0x51   :  { %308 = vmatpush.msrb.mxu2 %v179_v13  ;;  %241 = vmatmul.f32.gmra.mxu1 %v2086_v15  ;;  %v2163_v13 = vld [vmem:[#allocation10 + $0x170] sm:$0xff] }
  0x52   :  { %253 = vmatmul.f32.gmra.mxu2 %v2089_v16  ;;  %268 = vmatpush.msrb.mxu1 %v174_v18  ;;  %v2168_v18 = vld [vmem:[#allocation10 + $0x148] sm:$0xff] }
  0x53   :  { %309 = vmatpush.msrb.mxu2 %v175_v19  ;;  %364 = vmatmul.f32.gmra.mxu3 %v2086_v15  ;;  %v2170_v19 = vld [vmem:[#allocation10 + $0x38] sm:$0xff] }
  0x54   :  { %269 = vmatpush.msrb.mxu1 %v170_v21  ;;  %550 = vmatpush.msrb.mxu3 %v2094_v22  ;;  %3099 = vst [vmem:[#allocation36_spill] sm:$0xff] %v2170_v19  ;;  %v2174_v21 = vld [vmem:[#allocation10 + $0x150] sm:$0xff] }
  0x55   :  { %310 = vmatpush.msrb.mxu2 %v171_v24  ;;  %597 = vmatpush.msrb.mxu0 %v2017_v14  ;;  %v2178_v24 = vld [vmem:[#allocation10 + $0x128] sm:$0xff] }
  0x56   :  { %270 = vmatpush.msrb.mxu1 %v166_v25  ;;  %551 = vmatpush.msrb.mxu3 %v2098_v27  ;;  %v2180_v25 = vld [vmem:[#allocation10 + $0x18] sm:$0xff] }
  0x57   :  { %311 = vmatpush.msrb.mxu2 %v167_v28  ;;  %598 = vmatpush.msrb.mxu0 %v2020_v17  ;;  %3100 = vst [vmem:[#allocation37_spill] sm:$0xff] %v2180_v25  ;;  %v2183_v28 = vld [vmem:[#allocation10 + $0x130] sm:$0xff] }
  0x58   :  { %271 = vmatpush.msrb.mxu1 %v162_v30  ;;  %552 = vmatpush.msrb.mxu3 %v2101_v31  ;;  %v2191_v30 = vld [vmem:[#allocation10 + $0x110] sm:$0xff] }
  0x59   :  { %312 = vmatpush.msrb.mxu2 %v163_v33  ;;  %244 = vmatmul.f32.gmra.mxu1 %v2104_v34  ;;  %v2195_v33 = vld [vmem:[#allocation10 + $0xe8] sm:$0xff] }
  0x5a   :  { %256 = vmatmul.f32.gmra.mxu2 %v2107_v36  ;;  %272 = vmatpush.msrb.mxu1 %v158_v37  ;;  %v2199_v37 = vld [vmem:[#allocation10 + $0xf0] sm:$0xff] }
  0x5b   :  { %313 = vmatpush.msrb.mxu2 %v159_v39  ;;  %367 = vmatmul.f32.gmra.mxu3 %v2104_v34  ;;  %v2204_v39 = vld [vmem:[#allocation10 + $0xc8] sm:$0xff] }
  0x5c   :  { %273 = vmatpush.msrb.mxu1 %v154_v40  ;;  %553 = vmatpush.msrb.mxu3 %v2112_v42  ;;  %v2208_v40 = vld [vmem:[#allocation10 + $0xd0] sm:$0xff] }
  0x5d   :  { %314 = vmatpush.msrb.mxu2 %v155_v43  ;;  %599 = vmatpush.msrb.mxu0 %v2023_v20  ;;  %v2212_v43 = vld [vmem:[#allocation10 + $0xa8] sm:$0xff] }
  0x5e   :  { %274 = vmatpush.msrb.mxu1 %v150_v45  ;;  %554 = vmatpush.msrb.mxu3 %v2116_v46  ;;  %v2215_v45 = vld [vmem:[#allocation10 + $0xb0] sm:$0xff] }
  0x5f   :  { %315 = vmatpush.msrb.mxu2 %v151_v49  ;;  %600 = vmatpush.msrb.mxu0 %v2026_v23  ;;  %v2219_v49 = vld [vmem:[#allocation10 + $0x88] sm:$0xff] }
  0x60   :  { %275 = vmatpush.msrb.mxu1 %v146_v50  ;;  %555 = vmatpush.msrb.mxu3 %v2119_v52  ;;  %v2227_v50 = vld [vmem:[#allocation10 + $0x68] sm:$0xff] }
  0x61   :  { %316 = vmatpush.msrb.mxu2 %v147_v53  ;;  %276 = vmatmul.f32.vlgmr.msrb.gmra.mxu1 %v2050_v47  ;;  %3101 = vst [vmem:[#allocation38_spill] sm:$0xff] %v2227_v50  ;;  %v2231_v53 = vld [vmem:[#allocation10 + $0x70] sm:$0xff] }
  0x62   :  { %317 = vmatmul.f32.vlgmr.msrb.gmra.mxu2 %v2050_v47  ;;  %505 = vmatpush.msra.mxu1 %v2123_v55  ;;  %v2149_v47 = vld [vmem:[#allocation10 + $0x188] sm:$0xff]  ;;  %3102 = vst [vmem:[#allocation39_spill] sm:$0xff] %v2231_v53 }
  0x63   :  { %370 = vmatmul.f32.gmra.mxu3 %v2053_v48  ;;  %525 = vmatpush.msra.mxu2 %v2126_v57 }
  0x64   :  { %506 = vmatpush.msra.mxu1 %v2130_v58  ;;  %556 = vmatpush.msrb.mxu3 %v2132_v60 }
  0x65   :  { %526 = vmatpush.msra.mxu2 %v2136_v63  ;;  %601 = vmatpush.msrb.mxu0 %v2029_v26  ;;  %v2251_v26 = vld [vmem:[#allocation10 + $0x8] sm:$0xff] }
  0x66   :  { %507 = vmatpush.msra.mxu1 %v2140_v0  ;;  %557 = vmatpush.msrb.mxu3 %v2142_v1  ;;  %3107 = vst [vmem:[#allocation44_spill] sm:$0xff] %v2251_v26 }
  0x67   :  { %527 = vmatpush.msra.mxu2 %v2145_v3  ;;  %602 = vmatpush.msrb.mxu0 %v2032_v29  ;;  %v2247_v29 = vld [vmem:[#allocation10 + $0x30] sm:$0xff] }
  0x68   :  { %508 = vmatpush.msra.mxu1 %v2149_v47  ;;  %558 = vmatpush.msrb.mxu3 %v2151_v5  ;;  %3106 = vst [vmem:[#allocation43_spill] sm:$0xff] %v2247_v29 }
  0x69   :  { %279 = vmatmul.f32.gmra.mxu1 %v2068_v61  ;;  %528 = vmatpush.msra.mxu2 %v2155_v9 }
  0x6a   :  { %320 = vmatmul.f32.gmra.mxu2 %v2068_v61  ;;  %509 = vmatpush.msra.mxu1 %v2159_v10  ;;  %v2187_v61 = vld [vmem:[#allocation10 + $0x108] sm:$0xff] }
  0x6b   :  { %373 = vmatmul.f32.gmra.mxu3 %v2071_v62  ;;  %529 = vmatpush.msra.mxu2 %v2163_v13 }
  0x6c   :  { %510 = vmatpush.msra.mxu1 %v2168_v18  ;;  %559 = vmatpush.msrb.mxu3 %v2170_v19 }
  0x6d   :  { %530 = vmatpush.msra.mxu2 %v2174_v21  ;;  %603 = vmatpush.msrb.mxu0 %v2035_v32  ;;  %v2240_v32 = vld [vmem:[#allocation10 + $0x50] sm:$0xff] }
  0x6e   :  { %511 = vmatpush.msra.mxu1 %v2178_v24  ;;  %560 = vmatpush.msrb.mxu3 %v2180_v25  ;;  %3104 = vst [vmem:[#allocation41_spill] sm:$0xff] %v2240_v32 }
  0x6f   :  { %531 = vmatpush.msra.mxu2 %v2183_v28  ;;  %604 = vmatpush.msrb.mxu0 %v2038_v35  ;;  %v2236_v35 = vld [vmem:[#allocation10 + $0x48] sm:$0xff] }
  0x70   :  { %653 = vmatpush.msra.mxu3 %v2062_v56  ;;  %512 = vmatpush.msra.mxu1 %v2187_v61  ;;  %3103 = vst [vmem:[#allocation40_spill] sm:$0xff] %v2236_v35 }
  0x71   :  { %282 = vmatmul.f32.gmra.mxu1 %v2086_v15  ;;  %532 = vmatpush.msra.mxu2 %v2191_v30 }
  0x72   :  { %323 = vmatmul.f32.gmra.mxu2 %v2086_v15  ;;  %513 = vmatpush.msra.mxu1 %v2195_v33  ;;  %v2223_v15 = vld [vmem:[#allocation10 + $0x90] sm:$0xff] }
  0x73   :  { %376 = vmatmul.f32.gmra.mxu3 %v2089_v16  ;;  %533 = vmatpush.msra.mxu2 %v2199_v37 }
  0x74   :  { %514 = vmatpush.msra.mxu1 %v2204_v39  ;;  %654 = vmatpush.msra.mxu3 %v2066_v59 }
  0x75   :  { %534 = vmatpush.msra.mxu2 %v2208_v40  ;;  %605 = vmatpush.msrb.mxu0 %v2041_v38  ;;  %v2244_v38 = vld [vmem:[#allocation10 + $0x28] sm:$0xff] }
  0x76   :  { %515 = vmatpush.msra.mxu1 %v2212_v43  ;;  %655 = vmatpush.msra.mxu3 %v2076_v2  ;;  %3105 = vst [vmem:[#allocation42_spill] sm:$0xff] %v2244_v38 }
  0x77   :  { %535 = vmatpush.msra.mxu2 %v2215_v45  ;;  %606 = vmatpush.msrb.mxu0 %v2044_v41 }
  0x78   :  { %516 = vmatpush.msra.mxu1 %v2219_v49  ;;  %656 = vmatpush.msra.mxu3 %v2080_v7 }
  0x79   :  { %285 = vmatmul.f32.gmra.mxu1 %v2104_v34  ;;  %536 = vmatpush.msra.mxu2 %v2223_v15 }
  0x7a   :  { %326 = vmatmul.f32.gmra.mxu2 %v2104_v34  ;;  %517 = vmatpush.msra.mxu1 %v2227_v50  ;;  %v2255_v34 = vld [vmem:[#allocation10 + $0x10] sm:$0xff] }
  0x7b   :  { %379 = vmatmul.f32.gmra.mxu3 %v2107_v36  ;;  %537 = vmatpush.msra.mxu2 %v2231_v53  ;;  %3108 = vst [vmem:[#allocation45_spill] sm:$0xff] %v2255_v34 }
  0x7c   :  { %518 = vmatpush.msra.mxu1 %v2236_v35  ;;  %657 = vmatpush.msra.mxu3 %v2083_v12 }
  0x7d   :  { %538 = vmatpush.msra.mxu2 %v2240_v32  ;;  %607 = vmatpush.msrb.mxu0 %v2047_v44 }
  0x7e   :  { %519 = vmatpush.msra.mxu1 %v2244_v38  ;;  %658 = vmatpush.msra.mxu3 %v2094_v22 }
  0x7f   :  { %539 = vmatpush.msra.mxu2 %v2247_v29  ;;  %608 = vmatpush.msrb.mxu0 %v2056_v51 }
  0x80   :  { %520 = vmatpush.msra.mxu1 %v2251_v26  ;;  %659 = vmatpush.msra.mxu3 %v2098_v27 }
  0x81   :  { %288 = vmatmul.f32.gmra.mxu1 %v2053_v48  ;;  %540 = vmatpush.msra.mxu2 %v2255_v34 }
  0x82   :  { %329 = vmatmul.f32.gmra.mxu2 %v2053_v48  ;;  %613 = vmatpush.msrb.mxu1 %v2123_v55 }
  0x83   :  { %561 = vmatmul.f32.vlgmr.msrb.gmra.mxu3 %v2059_v54  ;;  %633 = vmatpush.msrb.mxu2 %v2126_v57 }
  0x84   :  { %614 = vmatpush.msrb.mxu1 %v2130_v58  ;;  %660 = vmatpush.msra.mxu3 %v2101_v31 }
  0x85   :  { %634 = vmatpush.msrb.mxu2 %v2136_v63  ;;  %702 = vmatpush.msra.mxu0 %v2006_v4  ;;  %v3109_v4 = vld [vmem:[#allocation26_spill] sm:$0xff] }
  0x86   :  { %615 = vmatpush.msrb.mxu1 %v2140_v0  ;;  %661 = vmatpush.msra.mxu3 %v2112_v42 }
  0x87   :  { %635 = vmatpush.msrb.mxu2 %v2145_v3  ;;  %703 = vmatpush.msra.mxu0 %v2009_v6  ;;  %v3110_v6 = vld [vmem:[#allocation27_spill] sm:$0xff] }
  0x88   :  { %616 = vmatpush.msrb.mxu1 %v2149_v47  ;;  %662 = vmatpush.msra.mxu3 %v2116_v46 }
  0x89   :  { %291 = vmatmul.f32.gmra.mxu1 %v2071_v62  ;;  %636 = vmatpush.msrb.mxu2 %v2155_v9 }
  0x8a   :  { %332 = vmatmul.f32.gmra.mxu2 %v2071_v62  ;;  %617 = vmatpush.msrb.mxu1 %v2159_v10 }
  0x8b   :  { %637 = vmatpush.msrb.mxu2 %v2163_v13  ;;  %663 = vmatpush.msra.mxu3 %v2119_v52 }
  0x8c   :  { %618 = vmatpush.msrb.mxu1 %v2168_v18  ;;  %704 = vmatpush.msra.mxu0 %v2011_v8  ;;  %v3111_v8 = vld [vmem:[#allocation28_spill] sm:$0xff] }
  0x8d   :  { %638 = vmatpush.msrb.mxu2 %v2174_v21  ;;  %664 = vmatpush.msra.mxu3 %v2132_v60 }
  0x8e   :  { %619 = vmatpush.msrb.mxu1 %v2178_v24  ;;  %705 = vmatpush.msra.mxu0 %v2014_v11  ;;  %v3112_v11 = vld [vmem:[#allocation29_spill] sm:$0xff] }
  0x8f   :  { %639 = vmatpush.msrb.mxu2 %v2183_v28  ;;  %665 = vmatpush.msra.mxu3 %v2142_v1 }
  0x90   :  { %620 = vmatpush.msrb.mxu1 %v2187_v61  ;;  %706 = vmatpush.msra.mxu0 %v2017_v14  ;;  %v3113_v14 = vld [vmem:[#allocation30_spill] sm:$0xff] }
  0x91   :  { %294 = vmatmul.f32.gmra.mxu1 %v2089_v16  ;;  %640 = vmatpush.msrb.mxu2 %v2191_v30 }
  0x92   :  { %335 = vmatmul.f32.gmra.mxu2 %v2089_v16  ;;  %621 = vmatpush.msrb.mxu1 %v2195_v33 }
  0x93   :  { %641 = vmatpush.msrb.mxu2 %v2199_v37  ;;  %666 = vmatpush.msra.mxu3 %v2151_v5 }
  0x94   :  { %622 = vmatpush.msrb.mxu1 %v2204_v39  ;;  %707 = vmatpush.msra.mxu0 %v2020_v17 }
  0x95   :  { %642 = vmatpush.msrb.mxu2 %v2208_v40  ;;  %667 = vmatpush.msra.mxu3 %v2170_v19 }
  0x96   :  { %623 = vmatpush.msrb.mxu1 %v2212_v43  ;;  %708 = vmatpush.msra.mxu0 %v2023_v20  ;;  %v209_v20 = vld [vmem:[#allocation9] sm:$0xf] }
  0x97   :  { %643 = vmatpush.msrb.mxu2 %v2215_v45  ;;  %668 = vmatpush.msra.mxu3 %v2180_v25 }
  0x98   :  { %624 = vmatpush.msrb.mxu1 %v2219_v49  ;;  %709 = vmatpush.msra.mxu0 %v2026_v23  ;;  %v211_v23 = vperm.slane %v209_v20, 0 }
  0x99   :  { %762 = vmatpush.msrb.mxu3 %v2062_v56  ;;  %297 = vmatmul.f32.gmra.mxu1 %v2107_v36 }
  0x9a   :  { %644 = vmatpush.msrb.mxu2 %v2223_v15  ;;  %625 = vmatpush.msrb.mxu1 %v2227_v50 }
  0x9b   :  { %338 = vmatmul.f32.gmra.mxu2 %v2107_v36  ;;  %763 = vmatpush.msrb.mxu3 %v2066_v59  ;;  %v2388_v36 = vperm.slane %v209_v20, 3 }
  0x9c   :  { %645 = vmatpush.msrb.mxu2 %v2231_v53  ;;  %626 = vmatpush.msrb.mxu1 %v2236_v35 }
  0x9d   :  { %764 = vmatpush.msrb.mxu3 %v2076_v2  ;;  %710 = vmatpush.msra.mxu0 %v3109_v4 }
  0x9e   :  { %646 = vmatpush.msrb.mxu2 %v2240_v32  ;;  %627 = vmatpush.msrb.mxu1 %v2244_v38 }
  0x9f   :  { %765 = vmatpush.msrb.mxu3 %v2080_v7  ;;  %711 = vmatpush.msra.mxu0 %v3110_v6 }
  0xa0   :  { %647 = vmatpush.msrb.mxu2 %v2247_v29  ;;  %628 = vmatpush.msrb.mxu1 %v2251_v26 }
  0xa1   :  { %521 = vmatmul.f32.vlgmr.msra.gmra.mxu1 %v2059_v54  ;;  %766 = vmatpush.msrb.mxu3 %v2083_v12 }
  0xa2   :  { %648 = vmatpush.msrb.mxu2 %v2255_v34  ;;  %722 = vmatpush.msra.mxu1 %v2123_v55 }
  0xa3   :  { %541 = vmatmul.f32.vlgmr.msra.gmra.mxu2 %v2059_v54  ;;  %767 = vmatpush.msrb.mxu3 %v2094_v22 }
  0xa4   :  { %742 = vmatpush.msra.mxu2 %v2126_v57  ;;  %723 = vmatpush.msra.mxu1 %v2130_v58 }
  0xa5   :  { %712 = vmatpush.msra.mxu0 %v3111_v8  ;;  %768 = vmatpush.msrb.mxu3 %v2098_v27 }
  0xa6   :  { %743 = vmatpush.msra.mxu2 %v2136_v63  ;;  %724 = vmatpush.msra.mxu1 %v2140_v0 }
  0xa7   :  { %713 = vmatpush.msra.mxu0 %v3112_v11  ;;  %769 = vmatpush.msrb.mxu3 %v2101_v31 }
  0xa8   :  { %744 = vmatpush.msra.mxu2 %v2145_v3  ;;  %725 = vmatpush.msra.mxu1 %v2149_v47 }
  0xa9   :  { %714 = vmatpush.msra.mxu0 %v3113_v14  ;;  %770 = vmatpush.msrb.mxu3 %v2112_v42 }
  0xaa   :  { %745 = vmatpush.msra.mxu2 %v2155_v9  ;;  %726 = vmatpush.msra.mxu1 %v2159_v10 }
  0xab   :  { %715 = vmatpush.msra.mxu0 %v2044_v41  ;;  %771 = vmatpush.msrb.mxu3 %v2116_v46 }
  0xac   :  { %746 = vmatpush.msra.mxu2 %v2163_v13  ;;  %727 = vmatpush.msra.mxu1 %v2168_v18 }
  0xad   :  { %716 = vmatpush.msra.mxu0 %v2047_v44  ;;  %772 = vmatpush.msrb.mxu3 %v2119_v52 }
  0xae   :  { %747 = vmatpush.msra.mxu2 %v2174_v21  ;;  %728 = vmatpush.msra.mxu1 %v2178_v24 }
  0xaf   :  { %717 = vmatpush.msra.mxu0 %v2056_v51  ;;  %773 = vmatpush.msrb.mxu3 %v2132_v60 }
  0xb0   :  { %748 = vmatpush.msra.mxu2 %v2183_v28  ;;  %729 = vmatpush.msra.mxu1 %v2187_v61 }
  0xb1   :  { %774 = vmatpush.msrb.mxu3 %v2142_v1 }
  0xb2   :  { %749 = vmatpush.msra.mxu2 %v2191_v30  ;;  %730 = vmatpush.msra.mxu1 %v2195_v33 }
  0xb3   :  { %775 = vmatpush.msrb.mxu3 %v2151_v5 }
  0xb4   :  { %750 = vmatpush.msra.mxu2 %v2199_v37  ;;  %731 = vmatpush.msra.mxu1 %v2204_v39 }
  0xb5   :  { %776 = vmatpush.msrb.mxu3 %v2170_v19 }
  0xb6   :  { %751 = vmatpush.msra.mxu2 %v2208_v40  ;;  %732 = vmatpush.msra.mxu1 %v2212_v43 }
  0xb7   :  { %777 = vmatpush.msrb.mxu3 %v2180_v25 }
  0xb8   :  { %752 = vmatpush.msra.mxu2 %v2215_v45  ;;  %733 = vmatpush.msra.mxu1 %v2219_v49 }
  0xba   :  { %753 = vmatpush.msra.mxu2 %v2223_v15  ;;  %734 = vmatpush.msra.mxu1 %v2227_v50 }
  0xbc   :  { %754 = vmatpush.msra.mxu2 %v2231_v53  ;;  %735 = vmatpush.msra.mxu1 %v2236_v35 }
  0xbe   :  { %755 = vmatpush.msra.mxu2 %v2240_v32  ;;  %v2376_v17 = vpop.f32.mrf.mxu1  ;;  %736 = vmatpush.msra.mxu1 %v2244_v38 }
  0xc0   :  { %756 = vmatpush.msra.mxu2 %v2247_v29  ;;  %737 = vmatpush.msra.mxu1 %v2251_v26 }
  0xc2   :  { %757 = vmatpush.msra.mxu2 %v2255_v34 }
  0xc4   :  { %v248_v41 = vpop.f32.mrf.mxu2 }
  0xc5   :  { %v2382_v48 = vadd.f32 %v248_v41, %v211_v23 }
  0xc6   :  { %v2384_v54 = vpop.f32.mrf.mxu3  ;;  %v239_v62 = vpop.f32.mrf.mxu1 }
  0xc7   :  { %3114 = vst [vmem:[#allocation26_spill] sm:$0xff] %v2382_v48  ;;  %v2386_v16 = vadd.f32 %v239_v62, %v211_v23 }
  0xc9   :  { %3115 = vst [vmem:[#allocation27_spill] sm:$0xff] %v2386_v16 }
  0xcc   :  { %v251_v4 = vpop.f32.mrf.mxu2 }
  0xcd   :  { %v2390_v6 = vadd.f32 %v251_v4, %v211_v23 }
  0xce   :  { %v362_v8 = vpop.f32.mrf.mxu3  ;;  %v242_v11 = vpop.f32.mrf.mxu1 }
  0xcf   :  { %3116 = vst [vmem:[#allocation28_spill] sm:$0xff] %v2390_v6  ;;  %v2393_v14 = vadd.f32 %v362_v8, %v2388_v36  ;;  %v2395_v25 = vadd.f32 %v242_v11, %v211_v23  ;;  %v212_v11 = vperm.slane %v209_v20, 1 }
  0xd1   :  { %3117 = vst [vmem:[#allocation29_spill] sm:$0xff] %v2393_v14 }
  0xd2   :  { %3118 = vst [vmem:[#allocation30_spill] sm:$0xff] %v2395_v25 }
  0xd5   :  { %v254_v34 = vpop.f32.mrf.mxu2 }
  0xd6   :  { %v2397_v41 = vadd.f32 %v254_v34, %v211_v23  ;;  %v365_v48 = vpop.f32.mrf.mxu3  ;;  %v245_v26 = vpop.f32.mrf.mxu1 }
  0xd7   :  { %v2400_v62 = vadd.f32 %v365_v48, %v2388_v36  ;;  %v2402_v16 = vadd.f32 %v245_v26, %v211_v23  ;;  %v213_v48 = vperm.slane %v209_v20, 2 }
  0xd8   :  { %3119 = vst [vmem:[#allocation46_spill] sm:$0xff] %v2397_v41 }
  0xd9   :  { %3120 = vst [vmem:[#allocation47_spill] sm:$0xff] %v2400_v62 }
  0xda   :  { %3121 = vst [vmem:[#allocation48_spill] sm:$0xff] %v2402_v16 }
  0xdd   :  { %v257_v51 = vpop.f32.mrf.mxu2 }
  0xde   :  { %v2404_v4 = vadd.f32 %v257_v51, %v211_v23  ;;  %v368_v6 = vpop.f32.mrf.mxu3  ;;  %v277_v19 = vpop.f32.mrf.mxu1 }
  0xdf   :  { %v2407_v8 = vadd.f32 %v368_v6, %v2388_v36 }
  0xe0   :  { %3122 = vst [vmem:[#allocation49_spill] sm:$0xff] %v2404_v4 }
  0xe1   :  { %3123 = vst [vmem:[#allocation50_spill] sm:$0xff] %v2407_v8 }
  0xe5   :  { %v318_v25 = vpop.f32.mrf.mxu2 }
  0xe6   :  { %v371_v14 = vpop.f32.mrf.mxu3  ;;  %v280_v34 = vpop.f32.mrf.mxu1 }
  0xe7   :  { %v2410_v41 = vadd.f32 %v371_v14, %v2388_v36  ;;  %v2412_v29 = vadd.f32 %v280_v34, %v212_v11 }
  0xe9   :  { %3124 = vst [vmem:[#allocation51_spill] sm:$0xff] %v2410_v41 }
  0xea   :  { %3125 = vst [vmem:[#allocation52_spill] sm:$0xff] %v2412_v29 }
  0xed   :  { %v321_v26 = vpop.f32.mrf.mxu2 }
  0xee   :  { %v2414_v16 = vadd.f32 %v321_v26, %v213_v48  ;;  %v374_v51 = vpop.f32.mrf.mxu3  ;;  %v283_v4 = vpop.f32.mrf.mxu1 }
  0xef   :  { %v2417_v62 = vadd.f32 %v374_v51, %v2388_v36  ;;  %v2419_v6 = vadd.f32 %v283_v4, %v212_v11 }
  0xf0   :  { %3126 = vst [vmem:[#allocation53_spill] sm:$0xff] %v2414_v16 }
  0xf1   :  { %3127 = vst [vmem:[#allocation54_spill] sm:$0xff] %v2417_v62 }
  0xf2   :  { %3128 = vst [vmem:[#allocation55_spill] sm:$0xff] %v2419_v6 }
  0xf5   :  { %v324_v8 = vpop.f32.mrf.mxu2 }
  0xf6   :  { %v2421_v38 = vadd.f32 %v324_v8, %v213_v48  ;;  %v377_v44 = vpop.f32.mrf.mxu3  ;;  %v286_v5 = vpop.f32.mrf.mxu1 }
  0xf7   :  { %v2424_v14 = vadd.f32 %v377_v44, %v2388_v36  ;;  %v2426_v34 = vadd.f32 %v286_v5, %v212_v11 }
  0xf8   :  { %3129 = vst [vmem:[#allocation56_spill] sm:$0xff] %v2421_v38 }
  0xf9   :  { %3130 = vst [vmem:[#allocation57_spill] sm:$0xff] %v2424_v14 }
  0xfa   :  { %3131 = vst [vmem:[#allocation58_spill] sm:$0xff] %v2426_v34 }
  0xfd   :  { %v327_v20 = vpop.f32.mrf.mxu2 }
  0xfe   :  { %v2428_v26 = vadd.f32 %v327_v20, %v213_v48  ;;  %v380_v41 = vpop.f32.mrf.mxu3  ;;  %v289_v16 = vpop.f32.mrf.mxu1  ;;  %v237_v20 = vadd.f32 %v2376_v17, %v211_v23  ;;  %v360_v17 = vadd.f32 %v2384_v54, %v2388_v36 }
  0xff   :  { %v2431_v51 = vadd.f32 %v380_v41, %v2388_v36  ;;  %v2433_v4 = vadd.f32 %v289_v16, %v212_v11 }
 0x100   :  { %3132 = vst [vmem:[#allocation59_spill] sm:$0xff] %v2428_v26  ;;  %v502_v26 = vpop.f32.mrf.mxu0 }
 0x101   :  { %3133 = vst [vmem:[#allocation60_spill] sm:$0xff] %v2431_v51 }
 0x102   :  { %3134 = vst [vmem:[#allocation61_spill] sm:$0xff] %v2433_v4  ;;  %v278_v4 = vadd.f32 %v277_v19, %v212_v11 }
 0x105   :  { %v330_v62 = vpop.f32.mrf.mxu2 }
 0x106   :  { %v2435_v8 = vadd.f32 %v330_v62, %v213_v48  ;;  %v292_v38 = vpop.f32.mrf.mxu1  ;;  %v565_v62 = vadd.f32 %v502_v26, %v237_v20 }
 0x107   :  { %v2437_v6 = vadd.f32 %v292_v38, %v212_v11 }
 0x108   :  { %3135 = vst [vmem:[#allocation62_spill] sm:$0xff] %v2435_v8  ;;  %v569_v8 = vmul.f32 0.5, %v565_v62  ;;  %v480_v62 = vld [vmem:[#allocation15] sm:$0xff] }
 0x109   :  { %3136 = vst [vmem:[#allocation63_spill] sm:$0xff] %v2437_v6 }
 0x10a   :  { %1514 = vtanh.f32 %v569_v8 }
 0x10d   :  { %v333_v44 = vpop.f32.mrf.mxu2 }
 0x10e   :  { %v2439_v14 = vadd.f32 %v333_v44, %v213_v48  ;;  %v295_v5 = vpop.f32.mrf.mxu1 }
 0x10f   :  { %v2441_v34 = vadd.f32 %v295_v5, %v212_v11  ;;  %v562_v5 = vpop.f32.mrf.mxu3 }
 0x110   :  { %3137 = vst [vmem:[#allocation64_spill] sm:$0xff] %v2439_v14 }
 0x111   :  { %3138 = vst [vmem:[#allocation65_spill] sm:$0xff] %v2441_v34  ;;  %v568_v34 = vadd.f32 %v562_v5, %v360_v17  ;;  %v2497_v5 = vld [vmem:[#allocation10 + $0x120] sm:$0xff] }
 0x112   :  { %v2503_v17 = vld [vmem:[#allocation10 + $0x100] sm:$0xff] }
 0x113   :  { %v578_v26 = vmul.f32 0.5, %v568_v34 }
 0x115   :  { %v336_v29 = vpop.f32.mrf.mxu2 }
 0x116   :  { %v2444_v41 = vadd.f32 %v336_v29, %v213_v48  ;;  %v298_v16 = vpop.f32.mrf.mxu1  ;;  %v319_v29 = vadd.f32 %v318_v25, %v213_v48 }
 0x117   :  { %v2446_v51 = vadd.f32 %v298_v16, %v212_v11  ;;  %v1515_v16 = vpop.eup %1514 }
 0x118   :  { %3139 = vst [vmem:[#allocation66_spill] sm:$0xff] %v2444_v41  ;;  %v571_v11 = vadd.f32 1.0, %v1515_v16  ;;  %v2521_v16 = vld [vmem:[#allocation10 + $0xa0] sm:$0xff] }
 0x119   :  { %3140 = vst [vmem:[#allocation67_spill] sm:$0xff] %v2446_v51 }
 0x11a   :  { %v572_v8 = vmul.f32 0.5, %v571_v11  ;;  %v2539_v11 = vld [vmem:[#allocation10 + $0x40] sm:$0xff] }
 0x11b   :  { %3145 = vst [vmem:[#allocation72_spill] sm:$0xff] %v2539_v11 }
 0x11e   :  { %v339_v38 = vpop.f32.mrf.mxu2  ;;  %v522_v44 = vpop.f32.mrf.mxu1 }
 0x11f   :  { %v2448_v6 = vadd.f32 %v339_v38, %v213_v48  ;;  %v566_v14 = vadd.f32 %v522_v44, %v278_v4 }
 0x121   :  { %3141 = vst [vmem:[#allocation68_spill] sm:$0xff] %v2448_v6  ;;  %v573_v23 = vmul.f32 0.5, %v566_v14 }
 0x123   :  { %1516 = vtanh.f32 %v573_v23  ;;  %v2509_v23 = vld [vmem:[#allocation10 + $0xe0] sm:$0xff] }
 0x126   :  { %v542_v41 = vpop.f32.mrf.mxu2 }
 0x127   :  { %v567_v51 = vadd.f32 %v542_v41, %v319_v29  ;;  %v2473_v41 = vld [vmem:[#allocation10 + $0x1a0] sm:$0xff] }
 0x128   :  { %v2515_v29 = vld [vmem:[#allocation10 + $0xc0] sm:$0xff] }
 0x129   :  { %1518 = vtanh.f32 %v567_v51  ;;  %v1517_v19 = vpop.eup %1516  ;;  %v2461_v51 = vld [vmem:[#allocation10 + $0x1e0] sm:$0xff] }
 0x12a   :  { %v575_v20 = vadd.f32 1.0, %v1517_v19  ;;  %1520 = vtanh.f32 %v578_v26  ;;  %v2527_v26 = vld [vmem:[#allocation10 + $0x80] sm:$0xff] }
 0x12b   :  { %3143 = vst [vmem:[#allocation70_spill] sm:$0xff] %v2527_v26  ;;  %v2533_v19 = vld [vmem:[#allocation10 + $0x60] sm:$0xff] }
 0x12c   :  { %v576_v4 = vmul.f32 0.5, %v575_v20  ;;  %3144 = vst [vmem:[#allocation71_spill] sm:$0xff] %v2533_v19  ;;  %v3146_v20 = vld [vmem:[#allocation35_spill] sm:$0xff] }
 0x12e   :  { %v582_v44 = vmul.f32 %v576_v4, %v480_v62  ;;  %v3147_v62 = vld [vmem:[#allocation31_spill] sm:$0xff]  ;;  %v3148_v4 = vld [vmem:[#allocation42_spill] sm:$0xff] }
 0x12f   :  { %v1519_v38 = vpop.eup %1518 }
 0x130   :  { %v583_v6 = vmul.f32 %v1519_v38, %v572_v8  ;;  %v1521_v54 = vpop.eup %1520  ;;  %v3149_v8 = vld [vmem:[#allocation43_spill] sm:$0xff]  ;;  %v3150_v38 = vld [vmem:[#allocation36_spill] sm:$0xff] }
 0x131   :  { %v580_v25 = vadd.f32 1.0, %v1521_v54  ;;  %v3152_v54 = vld [vmem:[#allocation44_spill] sm:$0xff] }
 0x132   :  { %v2452_v36 = vadd.f32 %v583_v6, %v582_v44  ;;  %v2467_v6 = vld [vmem:[#allocation10 + $0x1c0] sm:$0xff]  ;;  %v3151_v44 = vld [vmem:[#allocation32_spill] sm:$0xff] }
 0x133   :  { %v581_v48 = vmul.f32 0.5, %v580_v25  ;;  %v3153_v25 = vld [vmem:[#allocation45_spill] sm:$0xff] }
 0x134   :  { %1522 = vtanh.f32 %v2452_v36 }
 0x13a   :  { %v1523_v14 = vpop.eup %1522 }
 0x13b   :  { %v2455_v34 = vmul.f32 %v1523_v14, %v581_v48  ;;  %v3154_v48 = vld [vmem:[#allocation37_spill] sm:$0xff] }
 0x13d   :  { %3142 = vst [vmem:[#allocation69_spill] sm:$0xff] %v2455_v34  ;;  %609 = vmatmul.f32.vlgmr.msrb.gmra.mxu0 %v2455_v34  ;;  %629 = vmatmul.f32.vlgmr.msrb.gmra.mxu1 %v2455_v34 }
 0x13e   :  { %649 = vmatmul.f32.vlgmr.msrb.gmra.mxu2 %v2455_v34  ;;  %669 = vmatmul.f32.vlgmr.msra.gmra.mxu3 %v2455_v34 }
 0x13f   :  { %811 = vmatpush.msrb.mxu0 %v2461_v51  ;;  %831 = vmatpush.msrb.mxu1 %v2123_v55 }
 0x140   :  { %851 = vmatpush.msrb.mxu2 %v2126_v57  ;;  %871 = vmatpush.msra.mxu3 %v2062_v56  ;;  %v2479_v56 = vld [vmem:[#allocation10 + $0x180] sm:$0xff] }
 0x141   :  { %812 = vmatpush.msrb.mxu0 %v2467_v6  ;;  %832 = vmatpush.msrb.mxu1 %v2130_v58 }
 0x142   :  { %852 = vmatpush.msrb.mxu2 %v2136_v63  ;;  %872 = vmatpush.msra.mxu3 %v2066_v59  ;;  %v2485_v59 = vld [vmem:[#allocation10 + $0x160] sm:$0xff] }
 0x143   :  { %813 = vmatpush.msrb.mxu0 %v2473_v41  ;;  %833 = vmatpush.msrb.mxu1 %v2140_v0 }
 0x144   :  { %853 = vmatpush.msrb.mxu2 %v2145_v3  ;;  %873 = vmatpush.msra.mxu3 %v2076_v2  ;;  %v2491_v2 = vld [vmem:[#allocation10 + $0x140] sm:$0xff] }
 0x145   :  { %814 = vmatpush.msrb.mxu0 %v2479_v56  ;;  %834 = vmatpush.msrb.mxu1 %v2149_v47 }
 0x146   :  { %854 = vmatpush.msrb.mxu2 %v2155_v9  ;;  %874 = vmatpush.msra.mxu3 %v2080_v7 }
 0x147   :  { %815 = vmatpush.msrb.mxu0 %v2485_v59  ;;  %835 = vmatpush.msrb.mxu1 %v2159_v10 }
 0x148   :  { %855 = vmatpush.msrb.mxu2 %v2163_v13  ;;  %875 = vmatpush.msra.mxu3 %v2083_v12 }
 0x149   :  { %816 = vmatpush.msrb.mxu0 %v2491_v2  ;;  %836 = vmatpush.msrb.mxu1 %v2168_v18 }
 0x14a   :  { %856 = vmatpush.msrb.mxu2 %v2174_v21  ;;  %876 = vmatpush.msra.mxu3 %v2094_v22 }
 0x14b   :  { %817 = vmatpush.msrb.mxu0 %v2497_v5  ;;  %837 = vmatpush.msrb.mxu1 %v2178_v24 }
 0x14c   :  { %857 = vmatpush.msrb.mxu2 %v2183_v28  ;;  %877 = vmatpush.msra.mxu3 %v2098_v27 }
 0x14d   :  { %818 = vmatpush.msrb.mxu0 %v2503_v17  ;;  %838 = vmatpush.msrb.mxu1 %v2187_v61 }
 0x14e   :  { %858 = vmatpush.msrb.mxu2 %v2191_v30  ;;  %878 = vmatpush.msra.mxu3 %v2101_v31 }
 0x14f   :  { %819 = vmatpush.msrb.mxu0 %v2509_v23  ;;  %839 = vmatpush.msrb.mxu1 %v2195_v33 }
 0x150   :  { %859 = vmatpush.msrb.mxu2 %v2199_v37  ;;  %879 = vmatpush.msra.mxu3 %v2112_v42 }
 0x151   :  { %820 = vmatpush.msrb.mxu0 %v2515_v29  ;;  %840 = vmatpush.msrb.mxu1 %v2204_v39 }
 0x152   :  { %860 = vmatpush.msrb.mxu2 %v2208_v40  ;;  %880 = vmatpush.msra.mxu3 %v2116_v46 }
 0x153   :  { %821 = vmatpush.msrb.mxu0 %v2521_v16  ;;  %841 = vmatpush.msrb.mxu1 %v2212_v43 }
 0x154   :  { %861 = vmatpush.msrb.mxu2 %v2215_v45  ;;  %881 = vmatpush.msra.mxu3 %v2119_v52 }
 0x155   :  { %822 = vmatpush.msrb.mxu0 %v2527_v26  ;;  %842 = vmatpush.msrb.mxu1 %v2219_v49 }
 0x156   :  { %862 = vmatpush.msrb.mxu2 %v2223_v15  ;;  %882 = vmatpush.msra.mxu3 %v2132_v60 }
 0x157   :  { %823 = vmatpush.msrb.mxu0 %v2533_v19  ;;  %843 = vmatpush.msrb.mxu1 %v2227_v50 }
 0x158   :  { %863 = vmatpush.msrb.mxu2 %v2231_v53  ;;  %883 = vmatpush.msra.mxu3 %v2142_v1  ;;  %v3157_v1 = vld [vmem:[#allocation53_spill] sm:$0xff] }
 0x159   :  { %824 = vmatpush.msrb.mxu0 %v2539_v11  ;;  %844 = vmatpush.msrb.mxu1 %v2236_v35  ;;  %v3156_v35 = vld [vmem:[#allocation52_spill] sm:$0xff]  ;;  %v3158_v53 = vld [vmem:[#allocation29_spill] sm:$0xff] }
 0x15a   :  { %864 = vmatpush.msrb.mxu2 %v2240_v32  ;;  %884 = vmatpush.msra.mxu3 %v3146_v20  ;;  %v3155_v32 = vld [vmem:[#allocation27_spill] sm:$0xff] }
 0x15b   :  { %825 = vmatpush.msrb.mxu0 %v3147_v62  ;;  %845 = vmatpush.msrb.mxu1 %v3148_v4 }
 0x15c   :  { %865 = vmatpush.msrb.mxu2 %v3149_v8  ;;  %885 = vmatpush.msra.mxu3 %v3150_v38 }
 0x15d   :  { %826 = vmatpush.msrb.mxu0 %v3151_v44  ;;  %846 = vmatpush.msrb.mxu1 %v3152_v54 }
 0x15e   :  { %866 = vmatpush.msrb.mxu2 %v3153_v25  ;;  %886 = vmatpush.msra.mxu3 %v3154_v48 }
 0x1ba   :  { %v610_v14 = vpop.f32.mrf.mxu0  ;;  %v630_v34 = vpop.f32.mrf.mxu1 }
 0x1bb   :  { %v673_v20 = vadd.f32 %v610_v14, %v3155_v32  ;;  %v674_v62 = vadd.f32 %v630_v34, %v3156_v35 }
 0x1bd   :  { %v677_v11 = vmul.f32 0.5, %v673_v20  ;;  %v681_v4 = vmul.f32 0.5, %v674_v62 }
 0x1bf   :  { %1524 = vtanh.f32 %v677_v11 }
 0x1c0   :  { %1526 = vtanh.f32 %v681_v4 }
 0x1c1   :  { %v650_v8 = vpop.f32.mrf.mxu2  ;;  %v670_v38 = vpop.f32.mrf.mxu3 }
 0x1c2   :  { %v675_v44 = vadd.f32 %v650_v8, %v3157_v1  ;;  %v676_v54 = vadd.f32 %v670_v38, %v3158_v53 }
 0x1c4   :  { %1528 = vtanh.f32 %v675_v44  ;;  %v686_v25 = vmul.f32 0.5, %v676_v54 }
 0x1c5   :  { %v1525_v50 = vpop.eup %1524 }
 0x1c6   :  { %v1527_v48 = vpop.eup %1526  ;;  %v679_v19 = vadd.f32 1.0, %v1525_v50  ;;  %1530 = vtanh.f32 %v686_v25  ;;  %v2576_v50 = vld [vmem:[#allocation10 + $0x1d8] sm:$0xff]  ;;  %v3178_v25 = vld [vmem:[#allocation55_spill] sm:$0xff] }
 0x1c7   :  { %v683_v60 = vadd.f32 1.0, %v1527_v48 }
 0x1c8   :  { %v680_v32 = vmul.f32 0.5, %v679_v19  ;;  %v3177_v19 = vld [vmem:[#allocation30_spill] sm:$0xff] }
 0x1c9   :  { %v684_v14 = vmul.f32 0.5, %v683_v60  ;;  %v2570_v60 = vld [vmem:[#allocation10 + $0x1f8] sm:$0xff] }
 0x1ca   :  { %v1529_v35 = vpop.eup %1528 }
 0x1cb   :  { %v690_v34 = vmul.f32 %v684_v14, %v2452_v36  ;;  %v691_v11 = vmul.f32 %v1529_v35, %v680_v32  ;;  %v3179_v35 = vld [vmem:[#allocation56_spill] sm:$0xff] }
 0x1cc   :  { %v1531_v20 = vpop.eup %1530 }
 0x1cd   :  { %v2558_v4 = vadd.f32 %v691_v11, %v690_v34  ;;  %v688_v1 = vadd.f32 1.0, %v1531_v20  ;;  %v3180_v11 = vld [vmem:[#allocation47_spill] sm:$0xff] }
 0x1cf   :  { %1532 = vtanh.f32 %v2558_v4  ;;  %v689_v53 = vmul.f32 0.5, %v688_v1 }
 0x1d5   :  { %v1533_v8 = vpop.eup %1532 }
 0x1d6   :  { %v2561_v38 = vmul.f32 %v1533_v8, %v689_v53 }
 0x1d8   :  { %3159 = vst [vmem:[#allocation31_spill] sm:$0xff] %v2561_v38  ;;  %718 = vmatmul.f32.vlgmr.msra.gmra.mxu0 %v2561_v38  ;;  %738 = vmatmul.f32.vlgmr.msra.gmra.mxu1 %v2561_v38 }
 0x1d9   :  { %758 = vmatmul.f32.vlgmr.msra.gmra.mxu2 %v2561_v38  ;;  %778 = vmatmul.f32.vlgmr.msrb.gmra.mxu3 %v2561_v38  ;;  %v2880_v38 = vld [vmem:[#allocation10 + $0x8] sm:$0xff] }
 0x1da   :  { %920 = vmatpush.msra.mxu0 %v2461_v51  ;;  %940 = vmatpush.msra.mxu1 %v2123_v55  ;;  %v2582_v55 = vld [vmem:[#allocation10 + $0x1b8] sm:$0xff] }
 0x1db   :  { %960 = vmatpush.msra.mxu2 %v2126_v57  ;;  %980 = vmatpush.msrb.mxu3 %v2570_v60  ;;  %v3168_v57 = vld [vmem:[#allocation35_spill] sm:$0xff] }
 0x1dc   :  { %921 = vmatpush.msra.mxu0 %v2467_v6  ;;  %941 = vmatpush.msra.mxu1 %v2130_v58  ;;  %v2629_v58 = vld [vmem:[#allocation10 + $0x20] sm:$0xff] }
 0x1dd   :  { %961 = vmatpush.msra.mxu2 %v2136_v63  ;;  %981 = vmatpush.msrb.mxu3 %v2576_v50  ;;  %3169 = vst [vmem:[#allocation32_spill] sm:$0xff] %v2629_v58  ;;  %v3170_v63 = vld [vmem:[#allocation42_spill] sm:$0xff] }
 0x1de   :  { %922 = vmatpush.msra.mxu0 %v2473_v41  ;;  %942 = vmatpush.msra.mxu1 %v2140_v0  ;;  %v3171_v0 = vld [vmem:[#allocation43_spill] sm:$0xff] }
 0x1df   :  { %962 = vmatpush.msra.mxu2 %v2145_v3  ;;  %982 = vmatpush.msrb.mxu3 %v2582_v55  ;;  %v3172_v3 = vld [vmem:[#allocation36_spill] sm:$0xff] }
 0x1e0   :  { %923 = vmatpush.msra.mxu0 %v2479_v56  ;;  %943 = vmatpush.msra.mxu1 %v2149_v47  ;;  %v2635_v47 = vld [vmem:[#allocation10] sm:$0xff] }
 0x1e1   :  { %963 = vmatpush.msra.mxu2 %v2155_v9  ;;  %983 = vmatpush.msrb.mxu3 %v2080_v7  ;;  %v3160_v7 = vld [vmem:[#allocation33_spill] sm:$0xff]  ;;  %3173 = vst [vmem:[#allocation27_spill] sm:$0xff] %v2635_v47  ;;  %v3174_v9 = vld [vmem:[#allocation44_spill] sm:$0xff] }
 0x1e2   :  { %924 = vmatpush.msra.mxu0 %v2485_v59  ;;  %944 = vmatpush.msra.mxu1 %v2159_v10  ;;  %v3175_v10 = vld [vmem:[#allocation45_spill] sm:$0xff] }
 0x1e3   :  { %964 = vmatpush.msra.mxu2 %v2163_v13  ;;  %984 = vmatpush.msrb.mxu3 %v2083_v12  ;;  %v3161_v12 = vld [vmem:[#allocation71_spill] sm:$0xff]  ;;  %v3176_v13 = vld [vmem:[#allocation37_spill] sm:$0xff] }
 0x1e4   :  { %925 = vmatpush.msra.mxu0 %v2491_v2  ;;  %945 = vmatpush.msra.mxu1 %v2168_v18  ;;  %3200 = vst [vmem:[#allocation37_spill] sm:$0xff] %v2880_v38 }
 0x1e5   :  { %965 = vmatpush.msra.mxu2 %v2174_v21  ;;  %985 = vmatpush.msrb.mxu3 %v2094_v22  ;;  %v3162_v22 = vld [vmem:[#allocation38_spill] sm:$0xff] }
 0x1e6   :  { %926 = vmatpush.msra.mxu0 %v2497_v5  ;;  %946 = vmatpush.msra.mxu1 %v2178_v24 }
 0x1e7   :  { %966 = vmatpush.msra.mxu2 %v2183_v28  ;;  %986 = vmatpush.msrb.mxu3 %v2098_v27  ;;  %v3163_v27 = vld [vmem:[#allocation39_spill] sm:$0xff] }
 0x1e8   :  { %927 = vmatpush.msra.mxu0 %v2503_v17  ;;  %947 = vmatpush.msra.mxu1 %v2187_v61 }
 0x1e9   :  { %967 = vmatpush.msra.mxu2 %v2191_v30  ;;  %987 = vmatpush.msrb.mxu3 %v2101_v31  ;;  %v3164_v31 = vld [vmem:[#allocation34_spill] sm:$0xff] }
 0x1ea   :  { %928 = vmatpush.msra.mxu0 %v2509_v23  ;;  %948 = vmatpush.msra.mxu1 %v2195_v33 }
 0x1eb   :  { %968 = vmatpush.msra.mxu2 %v2199_v37  ;;  %988 = vmatpush.msrb.mxu3 %v2112_v42  ;;  %v3165_v42 = vld [vmem:[#allocation72_spill] sm:$0xff] }
 0x1ec   :  { %929 = vmatpush.msra.mxu0 %v2515_v29  ;;  %949 = vmatpush.msra.mxu1 %v2204_v39 }
 0x1ed   :  { %969 = vmatpush.msra.mxu2 %v2208_v40  ;;  %989 = vmatpush.msrb.mxu3 %v2116_v46  ;;  %v3166_v46 = vld [vmem:[#allocation40_spill] sm:$0xff] }
 0x1ee   :  { %930 = vmatpush.msra.mxu0 %v2521_v16  ;;  %950 = vmatpush.msra.mxu1 %v2212_v43 }
 0x1ef   :  { %970 = vmatpush.msra.mxu2 %v2215_v45  ;;  %990 = vmatpush.msrb.mxu3 %v2119_v52  ;;  %v3167_v52 = vld [vmem:[#allocation41_spill] sm:$0xff] }
 0x1f0   :  { %931 = vmatpush.msra.mxu0 %v2527_v26  ;;  %951 = vmatpush.msra.mxu1 %v2219_v49 }
 0x1f1   :  { %971 = vmatpush.msra.mxu2 %v2223_v15  ;;  %991 = vmatpush.msrb.mxu3 %v3160_v7 }
 0x1f2   :  { %932 = vmatpush.msra.mxu0 %v3161_v12  ;;  %952 = vmatpush.msra.mxu1 %v3162_v22 }
 0x1f3   :  { %972 = vmatpush.msra.mxu2 %v3163_v27  ;;  %992 = vmatpush.msrb.mxu3 %v3164_v31 }
 0x1f4   :  { %933 = vmatpush.msra.mxu0 %v3165_v42  ;;  %953 = vmatpush.msra.mxu1 %v3166_v46 }
 0x1f5   :  { %973 = vmatpush.msra.mxu2 %v3167_v52  ;;  %993 = vmatpush.msrb.mxu3 %v3168_v57 }
 0x1f6   :  { %934 = vmatpush.msra.mxu0 %v2629_v58  ;;  %954 = vmatpush.msra.mxu1 %v3170_v63 }
 0x1f7   :  { %974 = vmatpush.msra.mxu2 %v3171_v0  ;;  %994 = vmatpush.msrb.mxu3 %v3172_v3 }
 0x1f8   :  { %935 = vmatpush.msra.mxu0 %v2635_v47  ;;  %955 = vmatpush.msra.mxu1 %v3174_v9 }
 0x1f9   :  { %975 = vmatpush.msra.mxu2 %v3175_v10  ;;  %995 = vmatpush.msrb.mxu3 %v3176_v13 }
 0x255   :  { %v719_v18 = vpop.f32.mrf.mxu0  ;;  %v739_v36 = vpop.f32.mrf.mxu1 }
 0x256   :  { %v782_v54 = vadd.f32 %v719_v18, %v3177_v19  ;;  %v783_v48 = vadd.f32 %v739_v36, %v3178_v25 }
 0x258   :  { %v786_v62 = vmul.f32 0.5, %v782_v54  ;;  %v790_v44 = vmul.f32 0.5, %v783_v48 }
 0x25a   :  { %1534 = vtanh.f32 %v786_v62 }
 0x25b   :  { %1536 = vtanh.f32 %v790_v44 }
 0x25c   :  { %v759_v32 = vpop.f32.mrf.mxu2  ;;  %v779_v14 = vpop.f32.mrf.mxu3 }
 0x25d   :  { %v784_v34 = vadd.f32 %v759_v32, %v3179_v35  ;;  %v785_v20 = vadd.f32 %v779_v14, %v3180_v11  ;;  %v2659_v32 = vld [vmem:[#allocation10 + $0x1f0] sm:$0xff]  ;;  %v2664_v14 = vld [vmem:[#allocation10 + $0x1c8] sm:$0xff] }
 0x25e   :  { %v2667_v35 = vld [vmem:[#allocation10 + $0x1d0] sm:$0xff] }
 0x25f   :  { %1538 = vtanh.f32 %v784_v34  ;;  %v795_v1 = vmul.f32 0.5, %v785_v20  ;;  %v2672_v34 = vld [vmem:[#allocation10 + $0x1a8] sm:$0xff]  ;;  %v2675_v11 = vld [vmem:[#allocation10 + $0x1b0] sm:$0xff] }
 0x260   :  { %v1535_v53 = vpop.eup %1534  ;;  %v2680_v20 = vld [vmem:[#allocation10 + $0x188] sm:$0xff] }
 0x261   :  { %v1537_v8 = vpop.eup %1536  ;;  %v788_v7 = vadd.f32 1.0, %v1535_v53  ;;  %1540 = vtanh.f32 %v795_v1  ;;  %v2683_v1 = vld [vmem:[#allocation10 + $0x190] sm:$0xff]  ;;  %v2686_v53 = vld [vmem:[#allocation10 + $0x198] sm:$0xff] }
 0x262   :  { %v792_v31 = vadd.f32 1.0, %v1537_v8  ;;  %v2690_v8 = vld [vmem:[#allocation10 + $0x168] sm:$0xff] }
 0x263   :  { %v789_v57 = vmul.f32 0.5, %v788_v7  ;;  %v2693_v7 = vld [vmem:[#allocation10 + $0x170] sm:$0xff] }
 0x264   :  { %v793_v3 = vmul.f32 0.5, %v792_v31  ;;  %v2696_v31 = vld [vmem:[#allocation10 + $0x178] sm:$0xff] }
 0x265   :  { %v1539_v13 = vpop.eup %1538 }
 0x266   :  { %v799_v18 = vmul.f32 %v793_v3, %v2558_v4  ;;  %v800_v36 = vmul.f32 %v1539_v13, %v789_v57  ;;  %v2656_v4 = vld [vmem:[#allocation10 + $0x1e8] sm:$0xff]  ;;  %v2704_v3 = vld [vmem:[#allocation10 + $0x158] sm:$0xff] }
 0x267   :  { %v1541_v19 = vpop.eup %1540  ;;  %v2700_v57 = vld [vmem:[#allocation10 + $0x148] sm:$0xff]  ;;  %v2710_v13 = vld [vmem:[#allocation10 + $0x138] sm:$0xff] }
 0x268   :  { %v2646_v54 = vadd.f32 %v800_v36, %v799_v18  ;;  %v797_v25 = vadd.f32 1.0, %v1541_v19  ;;  %v3189_v18 = vld [vmem:[#allocation59_spill] sm:$0xff]  ;;  %v3190_v36 = vld [vmem:[#allocation50_spill] sm:$0xff] }
 0x26a   :  { %1542 = vtanh.f32 %v2646_v54  ;;  %v798_v48 = vmul.f32 0.5, %v797_v25 }
 0x270   :  { %v1543_v62 = vpop.eup %1542 }
 0x271   :  { %v2649_v44 = vmul.f32 %v1543_v62, %v798_v48 }
 0x273   :  { %3181 = vst [vmem:[#allocation52_spill] sm:$0xff] %v2649_v44  ;;  %827 = vmatmul.f32.vlgmr.msrb.gmra.mxu0 %v2649_v44  ;;  %847 = vmatmul.f32.vlgmr.msrb.gmra.mxu1 %v2649_v44 }
 0x274   :  { %867 = vmatmul.f32.vlgmr.msrb.gmra.mxu2 %v2649_v44  ;;  %887 = vmatmul.f32.vlgmr.msra.gmra.mxu3 %v2649_v44 }
 0x275   :  { %1029 = vmatpush.msrb.mxu0 %v2461_v51  ;;  %1049 = vmatpush.msrb.mxu1 %v2656_v4 }
 0x276   :  { %1069 = vmatpush.msrb.mxu2 %v2659_v32  ;;  %1089 = vmatpush.msra.mxu3 %v2570_v60 }
 0x277   :  { %1030 = vmatpush.msrb.mxu0 %v2467_v6  ;;  %1050 = vmatpush.msrb.mxu1 %v2664_v14 }
 0x278   :  { %1070 = vmatpush.msrb.mxu2 %v2667_v35  ;;  %1090 = vmatpush.msra.mxu3 %v2576_v50 }
 0x279   :  { %1031 = vmatpush.msrb.mxu0 %v2473_v41  ;;  %1051 = vmatpush.msrb.mxu1 %v2672_v34 }
 0x27a   :  { %1071 = vmatpush.msrb.mxu2 %v2675_v11  ;;  %1091 = vmatpush.msra.mxu3 %v2582_v55 }
 0x27b   :  { %1032 = vmatpush.msrb.mxu0 %v2479_v56  ;;  %1052 = vmatpush.msrb.mxu1 %v2680_v20 }
 0x27c   :  { %1072 = vmatpush.msrb.mxu2 %v2683_v1  ;;  %1092 = vmatpush.msra.mxu3 %v2686_v53 }
 0x27d   :  { %1033 = vmatpush.msrb.mxu0 %v2485_v59  ;;  %1053 = vmatpush.msrb.mxu1 %v2690_v8 }
 0x27e   :  { %1073 = vmatpush.msrb.mxu2 %v2693_v7  ;;  %1093 = vmatpush.msra.mxu3 %v2696_v31 }
 0x27f   :  { %1034 = vmatpush.msrb.mxu0 %v2491_v2  ;;  %1054 = vmatpush.msrb.mxu1 %v2700_v57 }
 0x280   :  { %1074 = vmatpush.msrb.mxu2 %v2174_v21  ;;  %1094 = vmatpush.msra.mxu3 %v2704_v3  ;;  %v2716_v21 = vld [vmem:[#allocation10 + $0x118] sm:$0xff] }
 0x281   :  { %1035 = vmatpush.msrb.mxu0 %v2497_v5  ;;  %1055 = vmatpush.msrb.mxu1 %v2178_v24  ;;  %v2722_v24 = vld [vmem:[#allocation10 + $0xf8] sm:$0xff] }
 0x282   :  { %1075 = vmatpush.msrb.mxu2 %v2183_v28  ;;  %1095 = vmatpush.msra.mxu3 %v2710_v13  ;;  %v2728_v28 = vld [vmem:[#allocation10 + $0xd8] sm:$0xff] }
 0x283   :  { %1036 = vmatpush.msrb.mxu0 %v2503_v17  ;;  %1056 = vmatpush.msrb.mxu1 %v2187_v61  ;;  %v2734_v61 = vld [vmem:[#allocation10 + $0xb8] sm:$0xff] }
 0x284   :  { %1076 = vmatpush.msrb.mxu2 %v2191_v30  ;;  %1096 = vmatpush.msra.mxu3 %v2716_v21  ;;  %v2740_v30 = vld [vmem:[#allocation10 + $0x98] sm:$0xff] }
 0x285   :  { %1037 = vmatpush.msrb.mxu0 %v2509_v23  ;;  %1057 = vmatpush.msrb.mxu1 %v2195_v33  ;;  %3182 = vst [vmem:[#allocation53_spill] sm:$0xff] %v2740_v30  ;;  %v2746_v33 = vld [vmem:[#allocation10 + $0x78] sm:$0xff] }
 0x286   :  { %1077 = vmatpush.msrb.mxu2 %v2199_v37  ;;  %1097 = vmatpush.msra.mxu3 %v2722_v24  ;;  %3183 = vst [vmem:[#allocation29_spill] sm:$0xff] %v2746_v33  ;;  %v2752_v37 = vld [vmem:[#allocation10 + $0x58] sm:$0xff] }
 0x287   :  { %1038 = vmatpush.msrb.mxu0 %v2515_v29  ;;  %1058 = vmatpush.msrb.mxu1 %v2204_v39  ;;  %3184 = vst [vmem:[#allocation33_spill] sm:$0xff] %v2752_v37  ;;  %v2758_v39 = vld [vmem:[#allocation10 + $0x38] sm:$0xff] }
 0x288   :  { %1078 = vmatpush.msrb.mxu2 %v2208_v40  ;;  %1098 = vmatpush.msra.mxu3 %v2728_v28  ;;  %3185 = vst [vmem:[#allocation38_spill] sm:$0xff] %v2758_v39  ;;  %v2764_v40 = vld [vmem:[#allocation10 + $0x18] sm:$0xff] }
 0x289   :  { %1039 = vmatpush.msrb.mxu0 %v2521_v16  ;;  %1059 = vmatpush.msrb.mxu1 %v2212_v43  ;;  %3186 = vst [vmem:[#allocation39_spill] sm:$0xff] %v2764_v40 }
 0x28a   :  { %1079 = vmatpush.msrb.mxu2 %v2215_v45  ;;  %1099 = vmatpush.msra.mxu3 %v2734_v61 }
 0x28b   :  { %1040 = vmatpush.msrb.mxu0 %v2527_v26  ;;  %1060 = vmatpush.msrb.mxu1 %v2219_v49  ;;  %v3187_v49 = vld [vmem:[#allocation48_spill] sm:$0xff] }
 0x28c   :  { %1080 = vmatpush.msrb.mxu2 %v2223_v15  ;;  %1100 = vmatpush.msra.mxu3 %v2740_v30 }
 0x28d   :  { %1041 = vmatpush.msrb.mxu0 %v3161_v12  ;;  %1061 = vmatpush.msrb.mxu1 %v3162_v22  ;;  %v3188_v22 = vld [vmem:[#allocation58_spill] sm:$0xff] }
 0x28e   :  { %1081 = vmatpush.msrb.mxu2 %v3163_v27  ;;  %1101 = vmatpush.msra.mxu3 %v2746_v33 }
 0x28f   :  { %1042 = vmatpush.msrb.mxu0 %v3165_v42  ;;  %1062 = vmatpush.msrb.mxu1 %v3166_v46 }
 0x290   :  { %1082 = vmatpush.msrb.mxu2 %v3167_v52  ;;  %1102 = vmatpush.msra.mxu3 %v2752_v37 }
 0x291   :  { %1043 = vmatpush.msrb.mxu0 %v2629_v58  ;;  %1063 = vmatpush.msrb.mxu1 %v3170_v63 }
 0x292   :  { %1083 = vmatpush.msrb.mxu2 %v3171_v0  ;;  %1103 = vmatpush.msra.mxu3 %v2758_v39 }
 0x293   :  { %1044 = vmatpush.msrb.mxu0 %v2635_v47  ;;  %1064 = vmatpush.msrb.mxu1 %v3174_v9 }
 0x294   :  { %1084 = vmatpush.msrb.mxu2 %v3175_v10  ;;  %1104 = vmatpush.msra.mxu3 %v2764_v40 }
 0x2f0   :  { %v828_v43 = vpop.f32.mrf.mxu0  ;;  %v848_v45 = vpop.f32.mrf.mxu1 }
 0x2f1   :  { %v891_v15 = vadd.f32 %v828_v43, %v3187_v49  ;;  %v892_v27 = vadd.f32 %v848_v45, %v3188_v22 }
 0x2f3   :  { %v895_v46 = vmul.f32 0.5, %v891_v15  ;;  %v899_v52 = vmul.f32 0.5, %v892_v27 }
 0x2f5   :  { %1544 = vtanh.f32 %v895_v46 }
 0x2f6   :  { %1546 = vtanh.f32 %v899_v52 }
 0x2f7   :  { %v868_v63 = vpop.f32.mrf.mxu2  ;;  %v888_v0 = vpop.f32.mrf.mxu3 }
 0x2f8   :  { %v893_v9 = vadd.f32 %v868_v63, %v3189_v18  ;;  %v894_v10 = vadd.f32 %v888_v0, %v3190_v36  ;;  %v2816_v36 = vld [vmem:[#allocation10 + $0x108] sm:$0xff] }
 0x2fa   :  { %1548 = vtanh.f32 %v893_v9  ;;  %v904_v19 = vmul.f32 0.5, %v894_v10  ;;  %v2811_v9 = vld [vmem:[#allocation10 + $0x130] sm:$0xff] }
 0x2fb   :  { %v1545_v25 = vpop.eup %1544  ;;  %v2819_v10 = vld [vmem:[#allocation10 + $0x110] sm:$0xff] }
 0x2fc   :  { %v1547_v48 = vpop.eup %1546  ;;  %v897_v62 = vadd.f32 1.0, %v1545_v25  ;;  %1550 = vtanh.f32 %v904_v19  ;;  %v2824_v19 = vld [vmem:[#allocation10 + $0xe8] sm:$0xff]  ;;  %v2827_v25 = vld [vmem:[#allocation10 + $0xf0] sm:$0xff] }
 0x2fd   :  { %v901_v44 = vadd.f32 1.0, %v1547_v48  ;;  %v2832_v48 = vld [vmem:[#allocation10 + $0xc8] sm:$0xff] }
 0x2fe   :  { %v898_v43 = vmul.f32 0.5, %v897_v62  ;;  %v2835_v62 = vld [vmem:[#allocation10 + $0xd0] sm:$0xff] }
 0x2ff   :  { %v902_v49 = vmul.f32 0.5, %v901_v44  ;;  %v2808_v44 = vld [vmem:[#allocation10 + $0x128] sm:$0xff] }
 0x300   :  { %v1549_v45 = vpop.eup %1548 }
 0x301   :  { %v908_v15 = vmul.f32 %v902_v49, %v2646_v54  ;;  %v909_v22 = vmul.f32 %v1549_v45, %v898_v43  ;;  %v2803_v54 = vld [vmem:[#allocation10 + $0x150] sm:$0xff]  ;;  %v2840_v43 = vld [vmem:[#allocation10 + $0xa8] sm:$0xff] }
 0x302   :  { %v1551_v27 = vpop.eup %1550  ;;  %v2843_v49 = vld [vmem:[#allocation10 + $0xb0] sm:$0xff]  ;;  %v2848_v45 = vld [vmem:[#allocation10 + $0x88] sm:$0xff] }
 0x303   :  { %v2772_v46 = vadd.f32 %v909_v22, %v908_v15  ;;  %v906_v52 = vadd.f32 1.0, %v1551_v27  ;;  %3192 = vst [vmem:[#allocation40_spill] sm:$0xff] %v2848_v45  ;;  %v2851_v15 = vld [vmem:[#allocation10 + $0x90] sm:$0xff]  ;;  %v2856_v22 = vld [vmem:[#allocation10 + $0x68] sm:$0xff] }
 0x304   :  { %3193 = vst [vmem:[#allocation41_spill] sm:$0xff] %v2851_v15  ;;  %v2859_v27 = vld [vmem:[#allocation10 + $0x70] sm:$0xff] }
 0x305   :  { %1552 = vtanh.f32 %v2772_v46  ;;  %v907_v63 = vmul.f32 0.5, %v906_v52  ;;  %3194 = vst [vmem:[#allocation35_spill] sm:$0xff] %v2856_v22  ;;  %v2864_v52 = vld [vmem:[#allocation10 + $0x48] sm:$0xff] }
 0x306   :  { %3195 = vst [vmem:[#allocation42_spill] sm:$0xff] %v2859_v27 }
 0x307   :  { %3196 = vst [vmem:[#allocation43_spill] sm:$0xff] %v2864_v52 }
 0x30b   :  { %v1553_v0 = vpop.eup %1552 }
 0x30c   :  { %v2775_v18 = vmul.f32 %v1553_v0, %v907_v63  ;;  %v2867_v63 = vld [vmem:[#allocation10 + $0x50] sm:$0xff]  ;;  %v2872_v0 = vld [vmem:[#allocation10 + $0x28] sm:$0xff] }
 0x30d   :  { %3197 = vst [vmem:[#allocation36_spill] sm:$0xff] %v2867_v63 }
 0x30e   :  { %3191 = vst [vmem:[#allocation34_spill] sm:$0xff] %v2775_v18  ;;  %936 = vmatmul.f32.vlgmr.msra.gmra.mxu0 %v2775_v18  ;;  %956 = vmatmul.f32.vlgmr.msra.gmra.mxu1 %v2775_v18 }
 0x30f   :  { %976 = vmatmul.f32.vlgmr.msra.gmra.mxu2 %v2775_v18  ;;  %996 = vmatmul.f32.vlgmr.msrb.gmra.mxu3 %v2775_v18  ;;  %3198 = vst [vmem:[#allocation44_spill] sm:$0xff] %v2872_v0  ;;  %v2875_v18 = vld [vmem:[#allocation10 + $0x30] sm:$0xff] }
 0x310   :  { %1138 = vmatpush.msra.mxu0 %v2461_v51  ;;  %1158 = vmatpush.msra.mxu1 %v2656_v4  ;;  %3199 = vst [vmem:[#allocation45_spill] sm:$0xff] %v2875_v18 }
 0x311   :  { %1178 = vmatpush.msra.mxu2 %v2659_v32  ;;  %1198 = vmatpush.msrb.mxu3 %v2570_v60 }
 0x312   :  { %1139 = vmatpush.msra.mxu0 %v2467_v6  ;;  %1159 = vmatpush.msra.mxu1 %v2664_v14 }
 0x313   :  { %1179 = vmatpush.msra.mxu2 %v2667_v35  ;;  %1199 = vmatpush.msrb.mxu3 %v2576_v50 }
 0x314   :  { %1140 = vmatpush.msra.mxu0 %v2473_v41  ;;  %1160 = vmatpush.msra.mxu1 %v2672_v34 }
 0x315   :  { %1180 = vmatpush.msra.mxu2 %v2675_v11  ;;  %1200 = vmatpush.msrb.mxu3 %v2582_v55 }
 0x316   :  { %1141 = vmatpush.msra.mxu0 %v2479_v56  ;;  %1161 = vmatpush.msra.mxu1 %v2680_v20 }
 0x317   :  { %1181 = vmatpush.msra.mxu2 %v2683_v1  ;;  %1201 = vmatpush.msrb.mxu3 %v2686_v53 }
 0x318   :  { %1142 = vmatpush.msra.mxu0 %v2485_v59  ;;  %1162 = vmatpush.msra.mxu1 %v2690_v8 }
 0x319   :  { %1182 = vmatpush.msra.mxu2 %v2693_v7  ;;  %1202 = vmatpush.msrb.mxu3 %v2696_v31 }
 0x31a   :  { %1143 = vmatpush.msra.mxu0 %v2491_v2  ;;  %1163 = vmatpush.msra.mxu1 %v2700_v57 }
 0x31b   :  { %1183 = vmatpush.msra.mxu2 %v2803_v54  ;;  %1203 = vmatpush.msrb.mxu3 %v2704_v3 }
 0x31c   :  { %1144 = vmatpush.msra.mxu0 %v2497_v5  ;;  %1164 = vmatpush.msra.mxu1 %v2808_v44 }
 0x31d   :  { %1184 = vmatpush.msra.mxu2 %v2811_v9  ;;  %1204 = vmatpush.msrb.mxu3 %v2710_v13 }
 0x31e   :  { %1145 = vmatpush.msra.mxu0 %v2503_v17  ;;  %1165 = vmatpush.msra.mxu1 %v2816_v36 }
 0x31f   :  { %1185 = vmatpush.msra.mxu2 %v2819_v10  ;;  %1205 = vmatpush.msrb.mxu3 %v2716_v21 }
 0x320   :  { %1146 = vmatpush.msra.mxu0 %v2509_v23  ;;  %1166 = vmatpush.msra.mxu1 %v2824_v19 }
 0x321   :  { %1186 = vmatpush.msra.mxu2 %v2827_v25  ;;  %1206 = vmatpush.msrb.mxu3 %v2722_v24 }
 0x322   :  { %1147 = vmatpush.msra.mxu0 %v2515_v29  ;;  %1167 = vmatpush.msra.mxu1 %v2832_v48 }
 0x323   :  { %1187 = vmatpush.msra.mxu2 %v2835_v62  ;;  %1207 = vmatpush.msrb.mxu3 %v2728_v28 }
 0x324   :  { %1148 = vmatpush.msra.mxu0 %v2521_v16  ;;  %1168 = vmatpush.msra.mxu1 %v2840_v43 }
 0x325   :  { %1188 = vmatpush.msra.mxu2 %v2843_v49  ;;  %1208 = vmatpush.msrb.mxu3 %v2734_v61 }
 0x326   :  { %1149 = vmatpush.msra.mxu0 %v2527_v26  ;;  %1169 = vmatpush.msra.mxu1 %v2848_v45 }
 0x327   :  { %1189 = vmatpush.msra.mxu2 %v2851_v15  ;;  %1209 = vmatpush.msrb.mxu3 %v2740_v30 }
 0x328   :  { %1150 = vmatpush.msra.mxu0 %v3161_v12  ;;  %1170 = vmatpush.msra.mxu1 %v2856_v22  ;;  %v3204_v22 = vld [vmem:[#allocation62_spill] sm:$0xff]  ;;  %v3205_v12 = vld [vmem:[#allocation51_spill] sm:$0xff] }
 0x329   :  { %1190 = vmatpush.msra.mxu2 %v2859_v27  ;;  %1210 = vmatpush.msrb.mxu3 %v2746_v33 }
 0x32a   :  { %1151 = vmatpush.msra.mxu0 %v3165_v42  ;;  %1171 = vmatpush.msra.mxu1 %v2864_v52  ;;  %v3203_v42 = vld [vmem:[#allocation61_spill] sm:$0xff] }
 0x32b   :  { %1191 = vmatpush.msra.mxu2 %v2867_v63  ;;  %1211 = vmatpush.msrb.mxu3 %v2752_v37  ;;  %v2883_v63 = vld [vmem:[#allocation10 + $0x10] sm:$0xff]  ;;  %v3202_v37 = vld [vmem:[#allocation26_spill] sm:$0xff] }
 0x32c   :  { %1152 = vmatpush.msra.mxu0 %v2629_v58  ;;  %1172 = vmatpush.msra.mxu1 %v2872_v0  ;;  %3201 = vst [vmem:[#allocation30_spill] sm:$0xff] %v2883_v63 }
 0x32d   :  { %1192 = vmatpush.msra.mxu2 %v2875_v18  ;;  %1212 = vmatpush.msrb.mxu3 %v2758_v39 }
 0x32e   :  { %1153 = vmatpush.msra.mxu0 %v2635_v47  ;;  %1173 = vmatpush.msra.mxu1 %v2880_v38 }
 0x32f   :  { %1193 = vmatpush.msra.mxu2 %v2883_v63  ;;  %1213 = vmatpush.msrb.mxu3 %v2764_v40 }
 0x38b   :  { %v937_v58 = vpop.f32.mrf.mxu0  ;;  %v957_v0 = vpop.f32.mrf.mxu1 }
 0x38c   :  { %v1000_v52 = vadd.f32 %v937_v58, %v3202_v37  ;;  %v1001_v18 = vadd.f32 %v957_v0, %v3203_v42  ;;  %v1374_v0 = vld [vmem:[#allocation12 + $0x68] sm:$0xff] }
 0x38e   :  { %v1004_v33 = vmul.f32 0.5, %v1000_v52  ;;  %v1008_v39 = vmul.f32 0.5, %v1001_v18 }
 0x390   :  { %1554 = vtanh.f32 %v1004_v33 }
 0x391   :  { %1556 = vtanh.f32 %v1008_v39 }
 0x392   :  { %v977_v47 = vpop.f32.mrf.mxu2  ;;  %v997_v27 = vpop.f32.mrf.mxu3 }
 0x393   :  { %v1002_v38 = vadd.f32 %v977_v47, %v3204_v22  ;;  %v1003_v30 = vadd.f32 %v997_v27, %v3205_v12  ;;  %v1376_v27 = vld [vmem:[#allocation12 + $0x78] sm:$0xff] }
 0x395   :  { %1558 = vtanh.f32 %v1002_v38  ;;  %v1013_v63 = vmul.f32 0.5, %v1003_v30 }
 0x396   :  { %v1555_v15 = vpop.eup %1554 }
 0x397   :  { %v1557_v40 = vpop.eup %1556  ;;  %v1006_v45 = vadd.f32 1.0, %v1555_v15  ;;  %1560 = vtanh.f32 %v1013_v63  ;;  %v1375_v63 = vld [vmem:[#allocation12 + $0x70] sm:$0xff] }
 0x398   :  { %v1010_v26 = vadd.f32 1.0, %v1557_v40 }
 0x399   :  { %v1007_v58 = vmul.f32 0.5, %v1006_v45 }
 0x39a   :  { %v1011_v37 = vmul.f32 0.5, %v1010_v26  ;;  %v3217_v26 = vld [vmem:[#allocation33_spill] sm:$0xff] }
 0x39b   :  { %v1559_v42 = vpop.eup %1558 }
 0x39c   :  { %v1017_v18 = vmul.f32 %v1011_v37, %v2772_v46  ;;  %v1018_v33 = vmul.f32 %v1559_v42, %v1007_v58  ;;  %v1373_v58 = vld [vmem:[#allocation12 + $0x60] sm:$0xff]  ;;  %v1372_v37 = vld [vmem:[#allocation12 + $0x58] sm:$0xff]  ;;  %v1371_v42 = vld [vmem:[#allocation12 + $0x50] sm:$0xff] }
 0x39d   :  { %v1561_v39 = vpop.eup %1560 }
 0x39e   :  { %v2892_v52 = vadd.f32 %v1018_v33, %v1017_v18  ;;  %v1015_v47 = vadd.f32 1.0, %v1561_v39  ;;  %v1370_v18 = vld [vmem:[#allocation12 + $0x48] sm:$0xff]  ;;  %v1369_v33 = vld [vmem:[#allocation12 + $0x40] sm:$0xff]  ;;  %v1368_v39 = vld [vmem:[#allocation12 + $0x38] sm:$0xff] }
 0x3a0   :  { %1562 = vtanh.f32 %v2892_v52  ;;  %v1016_v12 = vmul.f32 0.5, %v1015_v47  ;;  %v1366_v47 = vld [vmem:[#allocation12 + $0x28] sm:$0xff] }
 0x3a6   :  { %v1563_v38 = vpop.eup %1562 }
 0x3a7   :  { %v2895_v30 = vmul.f32 %v1563_v38, %v1016_v12  ;;  %v1365_v12 = vld [vmem:[#allocation12 + $0x20] sm:$0xff]  ;;  %v1364_v38 = vld [vmem:[#allocation12 + $0x18] sm:$0xff] }
 0x3a9   :  { %1045 = vmatmul.f32.vlgmr.msrb.gmra.mxu0 %v2895_v30  ;;  %1065 = vmatmul.f32.vlgmr.msrb.gmra.mxu1 %v2895_v30 }
 0x3aa   :  { %1085 = vmatmul.f32.vlgmr.msrb.gmra.mxu2 %v2895_v30  ;;  %1105 = vmatmul.f32.vlgmr.msra.gmra.mxu3 %v2895_v30 }
 0x3ab   :  { %1247 = vmatpush.msrb.mxu0 %v2461_v51  ;;  %1267 = vmatpush.msrb.mxu1 %v2656_v4  ;;  %v3206_v51 = vld [vmem:[#allocation70_spill] sm:$0xff] }
 0x3ac   :  { %1287 = vmatpush.msrb.mxu2 %v2659_v32  ;;  %1307 = vmatpush.msra.mxu3 %v2570_v60  ;;  %v3218_v60 = vld [vmem:[#allocation32_spill] sm:$0xff]  ;;  %v3221_v4 = vld [vmem:[#allocation38_spill] sm:$0xff]  ;;  %v3222_v32 = vld [vmem:[#allocation27_spill] sm:$0xff] }
 0x3ad   :  { %1248 = vmatpush.msrb.mxu0 %v2467_v6  ;;  %1268 = vmatpush.msrb.mxu1 %v2664_v14  ;;  %v3207_v6 = vld [vmem:[#allocation40_spill] sm:$0xff]  ;;  %v3223_v14 = vld [vmem:[#allocation37_spill] sm:$0xff] }
 0x3ae   :  { %1288 = vmatpush.msrb.mxu2 %v2667_v35  ;;  %1308 = vmatpush.msra.mxu3 %v2576_v50  ;;  %v3219_v50 = vld [vmem:[#allocation44_spill] sm:$0xff]  ;;  %v3224_v35 = vld [vmem:[#allocation30_spill] sm:$0xff] }
 0x3af   :  { %1249 = vmatpush.msrb.mxu0 %v2473_v41  ;;  %1269 = vmatpush.msrb.mxu1 %v2672_v34  ;;  %v3208_v41 = vld [vmem:[#allocation41_spill] sm:$0xff]  ;;  %v3225_v34 = vld [vmem:[#allocation39_spill] sm:$0xff] }
 0x3b0   :  { %1289 = vmatpush.msrb.mxu2 %v2675_v11  ;;  %1309 = vmatpush.msra.mxu3 %v2582_v55  ;;  %v3220_v55 = vld [vmem:[#allocation45_spill] sm:$0xff] }
 0x3b1   :  { %1250 = vmatpush.msrb.mxu0 %v2479_v56  ;;  %1270 = vmatpush.msrb.mxu1 %v2680_v20  ;;  %v3209_v56 = vld [vmem:[#allocation53_spill] sm:$0xff] }
 0x3b2   :  { %1290 = vmatpush.msrb.mxu2 %v2683_v1  ;;  %1310 = vmatpush.msra.mxu3 %v2686_v53  ;;  %v3226_v1 = vld [vmem:[#allocation28_spill] sm:$0xff] }
 0x3b3   :  { %1251 = vmatpush.msrb.mxu0 %v2485_v59  ;;  %1271 = vmatpush.msrb.mxu1 %v2690_v8  ;;  %v3210_v59 = vld [vmem:[#allocation71_spill] sm:$0xff] }
 0x3b4   :  { %1291 = vmatpush.msrb.mxu2 %v2693_v7  ;;  %1311 = vmatpush.msra.mxu3 %v2696_v31  ;;  %v3227_v8 = vld [vmem:[#allocation63_spill] sm:$0xff] }
 0x3b5   :  { %1252 = vmatpush.msrb.mxu0 %v2491_v2  ;;  %1272 = vmatpush.msrb.mxu1 %v2700_v57  ;;  %v3211_v2 = vld [vmem:[#allocation35_spill] sm:$0xff] }
 0x3b6   :  { %1292 = vmatpush.msrb.mxu2 %v2803_v54  ;;  %1312 = vmatpush.msra.mxu3 %v2704_v3 }
 0x3b7   :  { %1253 = vmatpush.msrb.mxu0 %v2497_v5  ;;  %1273 = vmatpush.msrb.mxu1 %v2808_v44  ;;  %v3212_v5 = vld [vmem:[#allocation42_spill] sm:$0xff] }
 0x3b8   :  { %1293 = vmatpush.msrb.mxu2 %v2811_v9  ;;  %1313 = vmatpush.msra.mxu3 %v2710_v13 }
 0x3b9   :  { %1254 = vmatpush.msrb.mxu0 %v2503_v17  ;;  %1274 = vmatpush.msrb.mxu1 %v2816_v36  ;;  %v3213_v17 = vld [vmem:[#allocation29_spill] sm:$0xff] }
 0x3ba   :  { %1294 = vmatpush.msrb.mxu2 %v2819_v10  ;;  %1314 = vmatpush.msra.mxu3 %v2716_v21  ;;  %v3228_v21 = vld [vmem:[#allocation64_spill] sm:$0xff] }
 0x3bb   :  { %1255 = vmatpush.msrb.mxu0 %v2509_v23  ;;  %1275 = vmatpush.msrb.mxu1 %v2824_v19  ;;  %v3214_v23 = vld [vmem:[#allocation72_spill] sm:$0xff] }
 0x3bc   :  { %1295 = vmatpush.msrb.mxu2 %v2827_v25  ;;  %1315 = vmatpush.msra.mxu3 %v2722_v24 }
 0x3bd   :  { %1256 = vmatpush.msrb.mxu0 %v2515_v29  ;;  %1276 = vmatpush.msrb.mxu1 %v2832_v48  ;;  %v3215_v29 = vld [vmem:[#allocation43_spill] sm:$0xff] }
 0x3be   :  { %1296 = vmatpush.msrb.mxu2 %v2835_v62  ;;  %1316 = vmatpush.msra.mxu3 %v2728_v28  ;;  %v3229_v28 = vld [vmem:[#allocation54_spill] sm:$0xff] }
 0x3bf   :  { %1257 = vmatpush.msrb.mxu0 %v2521_v16  ;;  %1277 = vmatpush.msrb.mxu1 %v2840_v43  ;;  %v3216_v16 = vld [vmem:[#allocation36_spill] sm:$0xff] }
 0x3c0   :  { %1297 = vmatpush.msrb.mxu2 %v2843_v49  ;;  %1317 = vmatpush.msra.mxu3 %v2734_v61 }
 0x3c1   :  { %1258 = vmatpush.msrb.mxu0 %v3206_v51  ;;  %1278 = vmatpush.msrb.mxu1 %v3207_v6  ;;  %v1363_v51 = vld [vmem:[#allocation12 + $0x10] sm:$0xff] }
 0x3c2   :  { %1298 = vmatpush.msrb.mxu2 %v3208_v41  ;;  %1318 = vmatpush.msra.mxu3 %v3209_v56  ;;  %v3230_v56 = vld [vmem:[#allocation46_spill] sm:$0xff] }
 0x3c3   :  { %1259 = vmatpush.msrb.mxu0 %v3210_v59  ;;  %1279 = vmatpush.msrb.mxu1 %v3211_v2  ;;  %v3231_v2 = vld [vmem:[#allocation65_spill] sm:$0xff] }
 0x3c4   :  { %1299 = vmatpush.msrb.mxu2 %v3212_v5  ;;  %1319 = vmatpush.msra.mxu3 %v3213_v17  ;;  %v1362_v17 = vld [vmem:[#allocation12 + $0x8] sm:$0xff] }
 0x3c5   :  { %1260 = vmatpush.msrb.mxu0 %v3214_v23  ;;  %1280 = vmatpush.msrb.mxu1 %v3215_v29 }
 0x3c6   :  { %1300 = vmatpush.msrb.mxu2 %v3216_v16  ;;  %1320 = vmatpush.msra.mxu3 %v3217_v26  ;;  %v1361_v16 = vld [vmem:[#allocation12] sm:$0xff] }
 0x3c7   :  { %1261 = vmatpush.msrb.mxu0 %v3218_v60  ;;  %1281 = vmatpush.msrb.mxu1 %v3219_v50  ;;  %v3232_v50 = vld [vmem:[#allocation66_spill] sm:$0xff] }
 0x3c8   :  { %1301 = vmatpush.msrb.mxu2 %v3220_v55  ;;  %1321 = vmatpush.msra.mxu3 %v3221_v4  ;;  %v3233_v4 = vld [vmem:[#allocation57_spill] sm:$0xff] }
 0x3c9   :  { %1262 = vmatpush.msrb.mxu0 %v3222_v32  ;;  %1282 = vmatpush.msrb.mxu1 %v3223_v14 }
 0x3ca   :  { %1302 = vmatpush.msrb.mxu2 %v3224_v35  ;;  %1322 = vmatpush.msra.mxu3 %v3225_v34 }
 0x426   :  { %v1046_v11 = vpop.f32.mrf.mxu0  ;;  %v1066_v20 = vpop.f32.mrf.mxu1 }
 0x427   :  { %v1109_v53 = vadd.f32 %v1046_v11, %v3226_v1  ;;  %v1110_v7 = vadd.f32 %v1066_v20, %v3227_v8 }
 0x429   :  { %v1113_v31 = vmul.f32 0.5, %v1109_v53  ;;  %v1117_v57 = vmul.f32 0.5, %v1110_v7 }
 0x42b   :  { %1564 = vtanh.f32 %v1113_v31 }
 0x42c   :  { %1566 = vtanh.f32 %v1117_v57 }
 0x42d   :  { %v1086_v3 = vpop.f32.mrf.mxu2  ;;  %v1106_v13 = vpop.f32.mrf.mxu3 }
 0x42e   :  { %v1111_v24 = vadd.f32 %v1086_v3, %v3228_v21  ;;  %v1112_v61 = vadd.f32 %v1106_v13, %v3229_v28 }
 0x430   :  { %1568 = vtanh.f32 %v1111_v24  ;;  %v1122_v40 = vmul.f32 0.5, %v1112_v61  ;;  %v3234_v61 = vld [vmem:[#allocation69_spill] sm:$0xff] }
 0x431   :  { %v1565_v46 = vpop.eup %1564 }
 0x432   :  { %v1567_v54 = vpop.eup %1566  ;;  %v1115_v44 = vadd.f32 1.0, %v1565_v46  ;;  %1570 = vtanh.f32 %v1122_v40  ;;  %v3235_v40 = vld [vmem:[#allocation31_spill] sm:$0xff]  ;;  %v3236_v46 = vld [vmem:[#allocation52_spill] sm:$0xff] }
 0x433   :  { %v1119_v9 = vadd.f32 1.0, %v1567_v54  ;;  %v3237_v54 = vld [vmem:[#allocation34_spill] sm:$0xff] }
 0x434   :  { %v1116_v36 = vmul.f32 0.5, %v1115_v44 }
 0x435   :  { %v1120_v10 = vmul.f32 0.5, %v1119_v9 }
 0x436   :  { %v1569_v19 = vpop.eup %1568 }
 0x437   :  { %v1126_v25 = vmul.f32 %v1120_v10, %v2892_v52  ;;  %v1127_v48 = vmul.f32 %v1569_v19, %v1116_v36  ;;  %v1367_v52 = vld [vmem:[#allocation12 + $0x30] sm:$0xff]  ;;  %v3238_v36 = vld [vmem:[#allocation49_spill] sm:$0xff]  ;;  %v3239_v19 = vld [vmem:[#allocation67_spill] sm:$0xff] }
 0x438   :  { %v1571_v62 = vpop.eup %1570 }
 0x439   :  { %v2970_v43 = vadd.f32 %v1127_v48, %v1126_v25  ;;  %v1124_v49 = vadd.f32 1.0, %v1571_v62 }
 0x43b   :  { %1572 = vtanh.f32 %v2970_v43  ;;  %v1125_v45 = vmul.f32 0.5, %v1124_v49 }
 0x441   :  { %v1573_v15 = vpop.eup %1572 }
 0x442   :  { %v2973_v22 = vmul.f32 %v1573_v15, %v1125_v45  ;;  %v3240_v45 = vld [vmem:[#allocation68_spill] sm:$0xff] }
 0x444   :  { %1154 = vmatmul.f32.vlgmr.msra.gmra.mxu0 %v2973_v22  ;;  %1174 = vmatmul.f32.vlgmr.msra.gmra.mxu1 %v2973_v22 }
 0x445   :  { %1194 = vmatmul.f32.vlgmr.msra.gmra.mxu2 %v2973_v22  ;;  %1214 = vmatmul.f32.vlgmr.msrb.gmra.mxu3 %v2973_v22 }
 0x446   :  { %1381 = vmatpush.msra.mxu0 %v1376_v27 }
 0x448   :  { %1382 = vmatpush.msra.mxu0 %v1375_v63 }
 0x44a   :  { %1383 = vmatpush.msra.mxu0 %v1374_v0 }
 0x44c   :  { %1384 = vmatpush.msra.mxu0 %v1373_v58 }
 0x44e   :  { %1385 = vmatpush.msra.mxu0 %v1372_v37 }
 0x450   :  { %1386 = vmatpush.msra.mxu0 %v1371_v42 }
 0x452   :  { %1387 = vmatpush.msra.mxu0 %v1370_v18 }
 0x454   :  { %1388 = vmatpush.msra.mxu0 %v1369_v33 }
 0x456   :  { %1389 = vmatpush.msra.mxu0 %v1368_v39 }
 0x458   :  { %1390 = vmatpush.msra.mxu0 %v1367_v52 }
 0x45a   :  { %1391 = vmatpush.msra.mxu0 %v1366_v47 }
 0x45c   :  { %1392 = vmatpush.msra.mxu0 %v1365_v12 }
 0x45e   :  { %1393 = vmatpush.msra.mxu0 %v1364_v38 }
 0x460   :  { %1394 = vmatpush.msra.mxu0 %v1363_v51 }
 0x462   :  { %1395 = vmatpush.msra.mxu0 %v1362_v17 }
 0x464   :  { %1396 = vmatpush.msra.mxu0 %v1361_v16 }
 0x4c1   :  { %v1155_v6 = vpop.f32.mrf.mxu0  ;;  %v1175_v41 = vpop.f32.mrf.mxu1 }
 0x4c2   :  { %v1218_v59 = vadd.f32 %v1155_v6, %v3230_v56  ;;  %v1219_v5 = vadd.f32 %v1175_v41, %v3231_v2 }
 0x4c4   :  { %v1222_v23 = vmul.f32 0.5, %v1218_v59  ;;  %v1226_v29 = vmul.f32 0.5, %v1219_v5 }
 0x4c6   :  { %1574 = vtanh.f32 %v1222_v23 }
 0x4c7   :  { %1576 = vtanh.f32 %v1226_v29 }
 0x4c8   :  { %v1195_v26 = vpop.f32.mrf.mxu2  ;;  %v1215_v60 = vpop.f32.mrf.mxu3 }
 0x4c9   :  { %v1220_v55 = vadd.f32 %v1195_v26, %v3232_v50  ;;  %v1221_v32 = vadd.f32 %v1215_v60, %v3233_v4 }
 0x4cb   :  { %1578 = vtanh.f32 %v1220_v55  ;;  %v1231_v14 = vmul.f32 0.5, %v1221_v32 }
 0x4cc   :  { %v1575_v35 = vpop.eup %1574 }
 0x4cd   :  { %v1577_v34 = vpop.eup %1576  ;;  %v1224_v11 = vadd.f32 1.0, %v1575_v35  ;;  %1580 = vtanh.f32 %v1231_v14 }
 0x4ce   :  { %v1228_v20 = vadd.f32 1.0, %v1577_v34 }
 0x4cf   :  { %v1225_v1 = vmul.f32 0.5, %v1224_v11 }
 0x4d0   :  { %v1229_v53 = vmul.f32 0.5, %v1228_v20 }
 0x4d1   :  { %v1579_v8 = vpop.eup %1578 }
 0x4d2   :  { %v1235_v7 = vmul.f32 %v1229_v53, %v2970_v43  ;;  %v1236_v31 = vmul.f32 %v1579_v8, %v1225_v1  ;;  %v2995_v43 = vld [vmem:[%s3024_s5] ss:$0 sm:$0xff]  ;;  %s1921_s5 = smov [#allocation17]  }
 0x4d3   :  { %v1581_v57 = vpop.eup %1580  ;;  %s1448_s27 = sshll.u32 %s1921_s5, 4  ;;  %s1449_s27 = int_to_ptr.vmem [resolvable:$true] %s1448_s27 }
 0x4d4   :  { %v1237_v3 = vadd.f32 %v1236_v31, %v1235_v7  ;;  %v1233_v13 = vadd.f32 1.0, %v1581_v57 }
 0x4d6   :  { %1582 = vtanh.f32 %v1237_v3  ;;  %v1234_v21 = vmul.f32 0.5, %v1233_v13 }
 0x4dc   :  { %v1583_v24 = vpop.eup %1582 }
 0x4dd   :  { %v1239_v28 = vmul.f32 %v1583_v24, %v1234_v21 }
 0x4df   :  { %1263 = vmatmul.f32.vlgmr.msrb.gmra.mxu0 %v1239_v28  ;;  %1283 = vmatmul.f32.vlgmr.msrb.gmra.mxu1 %v1239_v28 }
 0x4e0   :  { %1303 = vmatmul.f32.vlgmr.msrb.gmra.mxu2 %v1239_v28  ;;  %1323 = vmatmul.f32.vlgmr.msra.gmra.mxu3 %v1239_v28 }
 0x4e7   :  { %1397 = vmatmul.f32.vlgmr.msra.gmra.mxu0 %v3234_v61 }
 0x4ef   :  { %1400 = vmatmul.f32.gmra.mxu0 %v3235_v40 }
 0x4f7   :  { %1403 = vmatmul.f32.gmra.mxu0 %v3236_v46 }
 0x4ff   :  { %1406 = vmatmul.f32.gmra.mxu0 %v3237_v54 }
 0x507   :  { %1409 = vmatmul.f32.gmra.mxu0 %v2895_v30 }
 0x50f   :  { %1412 = vmatmul.f32.gmra.mxu0 %v2973_v22  ;;  %v3241_v22 = vld [vmem:[#allocation60_spill] sm:$0xff] }
 0x517   :  { %1415 = vmatmul.f32.gmra.mxu0 %v1239_v28 }
 0x55c   :  { %v1264_v44 = vpop.f32.mrf.mxu0  ;;  %v1284_v9 = vpop.f32.mrf.mxu1 }
 0x55d   :  { %v1327_v10 = vadd.f32 %v1264_v44, %v3238_v36  ;;  %v1328_v25 = vadd.f32 %v1284_v9, %v3239_v19 }
 0x55f   :  { %v1331_v48 = vmul.f32 0.5, %v1327_v10  ;;  %v1335_v62 = vmul.f32 0.5, %v1328_v25 }
 0x561   :  { %1584 = vtanh.f32 %v1331_v48 }
 0x562   :  { %1586 = vtanh.f32 %v1335_v62 }
 0x563   :  { %v1304_v49 = vpop.f32.mrf.mxu2  ;;  %v1324_v30 = vpop.f32.mrf.mxu3 }
 0x564   :  { %v1329_v15 = vadd.f32 %v1304_v49, %v3240_v45  ;;  %v1330_v27 = vadd.f32 %v1324_v30, %v3241_v22  ;;  %v1398_v63 = vpop.f32.mrf.mxu0 }
 0x565   :  { %v1399_v0 = vadd.f32 %v2995_v43, %v1398_v63 }
 0x566   :  { %1588 = vtanh.f32 %v1329_v15  ;;  %v1340_v58 = vmul.f32 0.5, %v1330_v27 }
 0x567   :  { %v1585_v37 = vpop.eup %1584  ;;  %1422 = vst [vmem:[#allocation16] sm:$0xff] %v1399_v0 }
 0x568   :  { %v1587_v42 = vpop.eup %1586  ;;  %v1333_v18 = vadd.f32 1.0, %v1585_v37  ;;  %1590 = vtanh.f32 %v1340_v58 }
 0x569   :  { %v1337_v33 = vadd.f32 1.0, %v1587_v42 }
 0x56a   :  { %v1334_v39 = vmul.f32 0.5, %v1333_v18 }
 0x56b   :  { %v1338_v52 = vmul.f32 0.5, %v1337_v33 }
 0x56c   :  { %v1589_v47 = vpop.eup %1588  ;;  %v1401_v12 = vpop.f32.mrf.mxu0 }
 0x56d   :  { %v1344_v38 = vmul.f32 %v1338_v52, %v1237_v3  ;;  %v1345_v51 = vmul.f32 %v1589_v47, %v1334_v39  ;;  %v1402_v6 = vadd.f32 %v2995_v43, %v1401_v12 }
 0x56e   :  { %v1591_v41 = vpop.eup %1590 }
 0x56f   :  { %v1346_v56 = vadd.f32 %v1345_v51, %v1344_v38  ;;  %1423 = vst [vmem:[#allocation16 + $0x8] sm:$0xff] %v1402_v6  ;;  %v1342_v59 = vadd.f32 1.0, %v1591_v41 }
 0x571   :  { %1352 = vst [vmem:[#allocation19] sm:$0xff] %v1346_v56  ;;  %1592 = vtanh.f32 %v1346_v56  ;;  %v1343_v17 = vmul.f32 0.5, %v1342_v59 }
 0x574   :  { %v1404_v2 = vpop.f32.mrf.mxu0 }
 0x575   :  { %v1405_v5 = vadd.f32 %v2995_v43, %v1404_v2 }
 0x577   :  { %v1593_v23 = vpop.eup %1592  ;;  %1424 = vst [vmem:[#allocation16 + $0x10] sm:$0xff] %v1405_v5 }
 0x578   :  { %v1348_v29 = vmul.f32 %v1593_v23, %v1343_v17 }
 0x57a   :  { %1418 = vmatmul.f32.gmra.mxu0 %v1348_v29  ;;  %1351 = vst [vmem:[#allocation17] sm:$0xff] %v1348_v29 }
 0x57b   :  { %1453 = dma.vmem_to_hbm [thread:$0]  %s1449_s27, 128, %s1451_s29, [#allocation18]  }
 0x57c   :  { %v1407_v16 = vpop.f32.mrf.mxu0  ;;  %1464 = dma.vmem_to_hbm [thread:$0]  %s1460_s11, 128, %s1462_s6, [#allocation18]  }
 0x57d   :  { %v1408_v26 = vadd.f32 %v2995_v43, %v1407_v16 }
 0x57f   :  { %1425 = vst [vmem:[#allocation16 + $0x18] sm:$0xff] %v1408_v26 }
 0x584   :  { %v1410_v60 = vpop.f32.mrf.mxu0 }
 0x585   :  { %v1411_v50 = vadd.f32 %v2995_v43, %v1410_v60 }
 0x587   :  { %1426 = vst [vmem:[#allocation16 + $0x20] sm:$0xff] %v1411_v50 }
 0x58c   :  { %v1413_v55 = vpop.f32.mrf.mxu0 }
 0x58d   :  { %v1414_v4 = vadd.f32 %v2995_v43, %v1413_v55 }
 0x58f   :  { %1427 = vst [vmem:[#allocation16 + $0x28] sm:$0xff] %v1414_v4 }
 0x594   :  { %v1416_v32 = vpop.f32.mrf.mxu0 }
 0x595   :  { %v1417_v14 = vadd.f32 %v2995_v43, %v1416_v32 }
 0x597   :  { %1428 = vst [vmem:[#allocation16 + $0x30] sm:$0xff] %v1417_v14 }
 0x5f7   :  { %v1419_v35 = vpop.f32.mrf.mxu0 }
 0x5f8   :  { %v1420_v34 = vadd.f32 %v2995_v43, %v1419_v35 }
 0x5fa   :  { %1429 = vst [vmem:[#allocation16 + $0x38] sm:$0xff] %v1420_v34 }
 0x5fb   :  { %1442 = dma.vmem_to_hbm [thread:$0]  %s1435_s15, 1024, %s1437_s0, [#allocation6], %s1916_s13, %s1916_s13, %s1917_s14  }
 0x5fc   :  { %1906 = dma.done.wait [#allocation6], 1024  }
 0x5fd   :  { %1907 = vsyncadd [#allocation6], 4294966272 }
 0x5fe   :  { %1908 = dma.done.wait [#allocation18], 256  }
 0x5ff   :  { %1909 = vsyncadd [#allocation18], 4294967040 }
 0x600   :  { %1477 = vsyncpa [#allocation5], 1 }
 0x601   :  { %1478 = vsyncpa [#allocation8], 1 }
 0x602   :  { %1479 = vsyncpa [#allocation11], 1 }
 0x603   :  { %1480 = vsyncpa [#allocation14], 1 }
 0x604   :  { %1481 = vsyncpa [#allocation6], 1 }
 0x605   :  { %1482 = vsyncpa [#allocation18], 1 }

</bundles_post_ra>
